<compile_context>
chip_gen: v6e
topology: v6e:2x2x1
jax: 0.10.0
libtpu: 0.0.40
codegen_flags: <defaults>
</compile_context>

<pallas_src>
import functools

import jax
import jax.numpy as jnp
from jax import lax
from jax.experimental import pallas as pl
from jax.experimental.pallas import tpu as pltpu


def _resnet_block_kernel(l0_ref, w_ref, b_ref, o_ref, *, B, Ho, Wo, C):
    """Whole ResnetBlock forward for B images, fully register/VMEM resident.

    Layout: feature maps are (B*Ho, Wo*C) with channels fastest in the lane
    dim; a 3x3 conv is one GEMM against block-diagonal weights whose rows
    follow the same (tap, out_col, channel) order as the im2col columns.
    """
    f32 = jnp.float32
    WC = Wo * C

    def im2col(y):
        # y: (B*Ho, Wo*C) -> (B*Ho, 9*Wo*C): the 9 zero-padded 3x3 taps, built
        # from full-height slices (no per-row loops); everything stays
        # lane-dense and in registers.
        zc = jnp.zeros((B * Ho, C), f32)
        yw = jnp.concatenate([zc, y, zc], axis=1)             # pad W by 1 col
        zr = jnp.zeros((1, (Wo + 2) * C), f32)
        blocks = []
        for b in range(B):                                    # pad H per image
            blocks += [zr, yw[b * Ho:(b + 1) * Ho, :], zr]
        xp = jnp.concatenate(blocks, axis=0)                  # (B*(Ho+2), (Wo+2)*C)
        taps = []
        for kh in range(3):
            for kw in range(3):
                rows = [xp[b * (Ho + 2) + kh:b * (Ho + 2) + kh + Ho,
                           kw * C:kw * C + WC] for b in range(B)]
                taps.append(rows[0] if B == 1 else jnp.concatenate(rows, axis=0))
        return jnp.concatenate(taps, axis=1)                  # (B*Ho, 9*Wo*C)

    def conv(lhs, c0, c1):
        # One fused 3x3 conv: GEMM against the packed block-diagonal weight
        # columns [c0:c1] plus the matching flattened-bias columns.
        return (jnp.dot(lhs, w_ref[:, c0:c1], preferred_element_type=f32)
                + b_ref[:, c0:c1])

    # Packed weight/bias column blocks: [down | in_conv | block1 | skep | block2]
    x1 = conv(l0_ref[...], 0 * WC, 1 * WC)        # down(x); stride-2 taps from host
    x2 = conv(im2col(x1), 1 * WC, 2 * WC)         # in_conv(x)
    z = conv(im2col(x2), 2 * WC, 4 * WC)          # block1 | skep share one LHS/GEMM
    h = jnp.maximum(z[:, :WC], 0.0)               # ReLU(block1) half
    skip = z[:, WC:]                              # skep(x) half (residual)
    y = conv(im2col(h), 4 * WC, 5 * WC) + skip    # block2 + residual, fused epilogue
    o_ref[...] = y.astype(o_ref.dtype)


def _block_diag_weight(w_pt, Wo):
    """(Cout, Cin, 3, 3) OIHW -> (9*Wo*Cin, Wo*Cout) block-diagonal GEMM matrix
    for the channel-fastest flattened layout (lane index = out_col*C + ch)."""
    eye = jnp.eye(Wo, dtype=jnp.float32)
    blocks = [jnp.kron(eye, w_pt[:, :, kh, kw].T.astype(jnp.float32))
              for kh in range(3) for kw in range(3)]
    return jnp.concatenate(blocks, axis=0)


def _flat_bias(b, Wo):
    return jnp.tile(b.astype(jnp.float32), Wo)    # index = out_col*Cout + ch


def resnet_block_forward(params, x_nchw, images_per_step=None):
    """Pallas implementation of ResnetBlock.forward (down=True, sk=False).

    images_per_step: batch images folded into the GEMM M dimension per grid
    step.  Default = all N (one grid step; best for single-TC v5e/v6e).  On
    v7x pass N//2 so each TensorCore takes one "parallel" step.
    """
    N, Cin, H, W = x_nchw.shape
    Cout = params['in_w'].shape[0]
    # sk=False applies skep to the in_conv output, so in_c == out_c is required
    # (same constraint as the PyTorch module); it also gives all five convs the
    # same contraction size 9*Wo*C so their weights pack into one matrix.
    assert Cin == Cout, "sk=False config requires in_c == out_c"
    C = Cout

    Ho = (H + 2 - 3) // 2 + 1
    Wo = (W + 2 - 3) // 2 + 1
    WC = Wo * C
    K = 9 * WC

    if images_per_step is None:
        images_per_step = N
    assert N % images_per_step == 0
    B = images_per_step
    steps = N // B
    M = B * Ho

    # --- host glue (tiny, XLA-fused): im2col taps for the single stride-2 conv
    # only, already in the channel-fastest layout. Intermediates never hit HBM.
    x = jnp.transpose(x_nchw, (0, 2, 3, 1)).astype(jnp.float32)        # NHWC
    xpad = jnp.pad(x, ((0, 0), (1, 1), (1, 1), (0, 0)))
    taps0 = [xpad[:, kh:kh + 2 * Ho - 1:2, kw:kw + 2 * Wo - 1:2, :]
             .reshape(N, Ho, WC)
             for kh in range(3) for kw in range(3)]
    l0 = jnp.concatenate(taps0, axis=-1).reshape(N * Ho, K)

    # --- all five conv weights packed into ONE (K, 5*WC) block-diagonal matrix
    # and one (1, 5*WC) flattened-bias row (single DMA each).
    w_all = jnp.concatenate(
        [_block_diag_weight(params['down_w'], Wo),
         _block_diag_weight(params['in_w'], Wo),
         _block_diag_weight(params['b1_w'], Wo),
         _block_diag_weight(params['sk_w'], Wo),
         _block_diag_weight(params['b2_w'], Wo)], axis=1)               # (K, 5*WC)
    b_all = jnp.concatenate(
        [_flat_bias(params['down_b'], Wo), _flat_bias(params['in_b'], Wo),
         _flat_bias(params['b1_b'], Wo), _flat_bias(params['sk_b'], Wo),
         _flat_bias(params['b2_b'], Wo)]).reshape(1, 5 * WC)

    flops = 2 * steps * M * K * (5 * WC)
    bytes_accessed = 4 * (l0.size + w_all.size + b_all.size + N * Ho * WC)

    out = pl.pallas_call(
        functools.partial(_resnet_block_kernel, B=B, Ho=Ho, Wo=Wo, C=C),
        out_shape=jax.ShapeDtypeStruct((N * Ho, WC), jnp.float32),
        grid_spec=pltpu.PrefetchScalarGridSpec(
            num_scalar_prefetch=0,
            grid=(steps,),                                   # default: 1 step
            in_specs=[
                pl.BlockSpec((M, K), lambda s: (s, 0)),       # stride-2 taps
                pl.BlockSpec((K, 5 * WC), lambda s: (0, 0)),  # packed weights
                pl.BlockSpec((1, 5 * WC), lambda s: (0, 0)),  # packed biases
            ],
            out_specs=pl.BlockSpec((M, WC), lambda s: (s, 0)),
        ),
        compiler_params=pltpu.CompilerParams(
            dimension_semantics=("parallel",)),     # megacore split when steps>1
        cost_estimate=pl.CostEstimate(
            flops=flops, transcendentals=0, bytes_accessed=bytes_accessed),
    )(l0, w_all, b_all)

    return jnp.transpose(out.reshape(N, Ho, Wo, Cout), (0, 3, 1, 2))   # NCHW


def init_params(key, in_c, out_c):
    """Deterministic synthetic parameters (PyTorch-like uniform fan-in init)."""
    def conv_init(k, cout, cin):
        kw_, kb_ = jax.random.split(k)
        bound = 1.0 / jnp.sqrt(cin * 9.0)
        w = jax.random.uniform(kw_, (cout, cin, 3, 3), jnp.float32, -bound, bound)
        bb = jax.random.uniform(kb_, (cout,), jnp.float32, -bound, bound)
        return w, bb

    ks = jax.random.split(key, 5)
    p = {}
    p['down_w'], p['down_b'] = conv_init(ks[0], in_c, in_c)   # Downsample (stride 2)
    p['in_w'],   p['in_b']   = conv_init(ks[1], out_c, in_c)  # in_conv
    p['b1_w'],   p['b1_b']   = conv_init(ks[2], out_c, out_c) # block1
    p['b2_w'],   p['b2_b']   = conv_init(ks[3], out_c, out_c) # block2
    p['sk_w'],   p['sk_b']   = conv_init(ks[4], out_c, in_c)  # skep
    return p


# ----------------------- pure-JAX reference (NCHW) -------------------------
def _conv_ref(x, w, b, stride=1):
    y = lax.conv_general_dilated(x, w, (stride, stride), ((1, 1), (1, 1)),
                                 dimension_numbers=('NCHW', 'OIHW', 'NCHW'))
    return y + b[None, :, None, None]


def resnet_block_ref(params, x):
    x = _conv_ref(x, params['down_w'], params['down_b'], stride=2)
    x = _conv_ref(x, params['in_w'], params['in_b'])
    h = jax.nn.relu(_conv_ref(x, params['b1_w'], params['b1_b']))
    h = _conv_ref(h, params['b2_w'], params['b2_b'])
    return h + _conv_ref(x, params['sk_w'], params['sk_b'])


if __name__ == "__main__":
    key = jax.random.PRNGKey(0)
    k_param, k_x = jax.random.split(key)

    in_c = out_c = 4          # sk=False requires in_c == out_c to be runnable
    N, H, W = 2, 16, 16
    params = init_params(k_param, in_c, out_c)
    x = jax.random.normal(k_x, (N, in_c, H, W), jnp.float32)   # NCHW, like PyTorch

    fwd = jax.jit(resnet_block_forward)
    out = jax.block_until_ready(fwd(params, x))

    ref = resnet_block_ref(params, x)
    assert out.shape == ref.shape == (N, out_c, H // 2, W // 2), out.shape
    err = float(jnp.max(jnp.abs(out - ref)))
    assert jnp.allclose(out, ref, atol=1e-4, rtol=1e-4), err

    print("KERNEL_OK")
</pallas_src>

<mosaic_0001>
module attributes {stable_mosaic.version = 11 : i64} {
  func.func @_resnet_block_kernel(%arg0: i32, %arg1: memref<16x288xf32, #tpu.memory_space<vmem>>, %arg2: memref<288x160xf32, #tpu.memory_space<vmem>>, %arg3: memref<1x160xf32, #tpu.memory_space<vmem>>, %arg4: memref<16x32xf32, #tpu.memory_space<vmem>>) attributes {dimension_semantics = [#tpu.dimension_semantics<parallel>], iteration_bounds = array<i64: 1>, scalar_prefetch = 0 : i64, scratch_operands = 0 : i64, tpu.core_type = #tpu.core_type<tc>, window_params = [{transform_indices = @transform_0, window_bounds = array<i64: 16, 288>}, {pipeline_mode = #tpu.pipeline_mode<synchronous>, transform_indices = @transform_1, window_bounds = array<i64: 288, 160>}, {pipeline_mode = #tpu.pipeline_mode<synchronous>, transform_indices = @transform_2, window_bounds = array<i64: 1, 160>}, {transform_indices = @transform_3, window_bounds = array<i64: 16, 32>}]} {
    %c0 = arith.constant 0 : index
    %c0_0 = arith.constant 0 : index
    %0 = vector.load %arg1[%c0, %c0_0] : memref<16x288xf32, #tpu.memory_space<vmem>>, vector<16x288xf32>
    %c0_1 = arith.constant 0 : index
    %c0_2 = arith.constant 0 : index
    %1 = vector.load %arg2[%c0_1, %c0_2] : memref<288x160xf32, #tpu.memory_space<vmem>>, vector<288x32xf32>
    %cst = arith.constant dense<0.000000e+00> : vector<16x32xf32>
    %2 = tpu.matmul %0, %1, %cst {dimension_numbers = #tpu.dot_dimension_numbers<[1], [0], [0], [1], [0, 0, 1, 1], [], []>} : vector<16x288xf32>, vector<288x32xf32>, vector<16x32xf32> -> vector<16x32xf32>
    %c0_3 = arith.constant 0 : index
    %c0_4 = arith.constant 0 : index
    %3 = vector.load %arg3[%c0_3, %c0_4] : memref<1x160xf32, #tpu.memory_space<vmem>>, vector<1x32xf32>
    %4 = vector.broadcast %3 : vector<1x32xf32> to vector<16x32xf32>
    %5 = arith.addf %2, %4 : vector<16x32xf32>
    %cst_5 = arith.constant 0.000000e+00 : f32
    %6 = vector.broadcast %cst_5 : f32 to vector<16x4xf32>
    %7 = tpu.concatenate %6, %5, %6 in 1 : vector<16x4xf32>, vector<16x32xf32>, vector<16x4xf32> -> vector<16x40xf32>
    %cst_6 = arith.constant 0.000000e+00 : f32
    %8 = vector.broadcast %cst_6 : f32 to vector<1x40xf32>
    %9 = vector.extract_strided_slice %7 {offsets = [0, 0], sizes = [8, 40], strides = [1, 1]} : vector<16x40xf32> to vector<8x40xf32>
    %10 = vector.extract_strided_slice %7 {offsets = [8, 0], sizes = [8, 40], strides = [1, 1]} : vector<16x40xf32> to vector<8x40xf32>
    %11 = tpu.concatenate %8, %9, %8, %8, %10, %8 in 0 : vector<1x40xf32>, vector<8x40xf32>, vector<1x40xf32>, vector<1x40xf32>, vector<8x40xf32>, vector<1x40xf32> -> vector<20x40xf32>
    %12 = vector.extract_strided_slice %11 {offsets = [0, 0], sizes = [8, 32], strides = [1, 1]} : vector<20x40xf32> to vector<8x32xf32>
    %13 = vector.extract_strided_slice %11 {offsets = [10, 0], sizes = [8, 32], strides = [1, 1]} : vector<20x40xf32> to vector<8x32xf32>
    %14 = tpu.concatenate %12, %13 in 0 : vector<8x32xf32>, vector<8x32xf32> -> vector<16x32xf32>
    %15 = vector.extract_strided_slice %11 {offsets = [0, 4], sizes = [8, 32], strides = [1, 1]} : vector<20x40xf32> to vector<8x32xf32>
    %16 = vector.extract_strided_slice %11 {offsets = [10, 4], sizes = [8, 32], strides = [1, 1]} : vector<20x40xf32> to vector<8x32xf32>
    %17 = tpu.concatenate %15, %16 in 0 : vector<8x32xf32>, vector<8x32xf32> -> vector<16x32xf32>
    %18 = vector.extract_strided_slice %11 {offsets = [0, 8], sizes = [8, 32], strides = [1, 1]} : vector<20x40xf32> to vector<8x32xf32>
    %19 = vector.extract_strided_slice %11 {offsets = [10, 8], sizes = [8, 32], strides = [1, 1]} : vector<20x40xf32> to vector<8x32xf32>
    %20 = tpu.concatenate %18, %19 in 0 : vector<8x32xf32>, vector<8x32xf32> -> vector<16x32xf32>
    %21 = vector.extract_strided_slice %11 {offsets = [1, 0], sizes = [8, 32], strides = [1, 1]} : vector<20x40xf32> to vector<8x32xf32>
    %22 = vector.extract_strided_slice %11 {offsets = [11, 0], sizes = [8, 32], strides = [1, 1]} : vector<20x40xf32> to vector<8x32xf32>
    %23 = tpu.concatenate %21, %22 in 0 : vector<8x32xf32>, vector<8x32xf32> -> vector<16x32xf32>
    %24 = vector.extract_strided_slice %11 {offsets = [1, 4], sizes = [8, 32], strides = [1, 1]} : vector<20x40xf32> to vector<8x32xf32>
    %25 = vector.extract_strided_slice %11 {offsets = [11, 4], sizes = [8, 32], strides = [1, 1]} : vector<20x40xf32> to vector<8x32xf32>
    %26 = tpu.concatenate %24, %25 in 0 : vector<8x32xf32>, vector<8x32xf32> -> vector<16x32xf32>
    %27 = vector.extract_strided_slice %11 {offsets = [1, 8], sizes = [8, 32], strides = [1, 1]} : vector<20x40xf32> to vector<8x32xf32>
    %28 = vector.extract_strided_slice %11 {offsets = [11, 8], sizes = [8, 32], strides = [1, 1]} : vector<20x40xf32> to vector<8x32xf32>
    %29 = tpu.concatenate %27, %28 in 0 : vector<8x32xf32>, vector<8x32xf32> -> vector<16x32xf32>
    %30 = vector.extract_strided_slice %11 {offsets = [2, 0], sizes = [8, 32], strides = [1, 1]} : vector<20x40xf32> to vector<8x32xf32>
    %31 = vector.extract_strided_slice %11 {offsets = [12, 0], sizes = [8, 32], strides = [1, 1]} : vector<20x40xf32> to vector<8x32xf32>
    %32 = tpu.concatenate %30, %31 in 0 : vector<8x32xf32>, vector<8x32xf32> -> vector<16x32xf32>
    %33 = vector.extract_strided_slice %11 {offsets = [2, 4], sizes = [8, 32], strides = [1, 1]} : vector<20x40xf32> to vector<8x32xf32>
    %34 = vector.extract_strided_slice %11 {offsets = [12, 4], sizes = [8, 32], strides = [1, 1]} : vector<20x40xf32> to vector<8x32xf32>
    %35 = tpu.concatenate %33, %34 in 0 : vector<8x32xf32>, vector<8x32xf32> -> vector<16x32xf32>
    %36 = vector.extract_strided_slice %11 {offsets = [2, 8], sizes = [8, 32], strides = [1, 1]} : vector<20x40xf32> to vector<8x32xf32>
    %37 = vector.extract_strided_slice %11 {offsets = [12, 8], sizes = [8, 32], strides = [1, 1]} : vector<20x40xf32> to vector<8x32xf32>
    %38 = tpu.concatenate %36, %37 in 0 : vector<8x32xf32>, vector<8x32xf32> -> vector<16x32xf32>
    %39 = tpu.concatenate %14, %17, %20, %23, %26, %29, %32, %35, %38 in 1 : vector<16x32xf32>, vector<16x32xf32>, vector<16x32xf32>, vector<16x32xf32>, vector<16x32xf32>, vector<16x32xf32>, vector<16x32xf32>, vector<16x32xf32>, vector<16x32xf32> -> vector<16x288xf32>
    %c0_7 = arith.constant 0 : index
    %c32 = arith.constant 32 : index
    %40 = vector.load %arg2[%c0_7, %c32] : memref<288x160xf32, #tpu.memory_space<vmem>>, vector<288x32xf32>
    %cst_8 = arith.constant dense<0.000000e+00> : vector<16x32xf32>
    %41 = tpu.matmul %39, %40, %cst_8 {dimension_numbers = #tpu.dot_dimension_numbers<[1], [0], [0], [1], [0, 0, 1, 1], [], []>} : vector<16x288xf32>, vector<288x32xf32>, vector<16x32xf32> -> vector<16x32xf32>
    %c0_9 = arith.constant 0 : index
    %c32_10 = arith.constant 32 : index
    %42 = vector.load %arg3[%c0_9, %c32_10] : memref<1x160xf32, #tpu.memory_space<vmem>>, vector<1x32xf32>
    %43 = vector.broadcast %42 : vector<1x32xf32> to vector<16x32xf32>
    %44 = arith.addf %41, %43 : vector<16x32xf32>
    %cst_11 = arith.constant 0.000000e+00 : f32
    %45 = vector.broadcast %cst_11 : f32 to vector<16x4xf32>
    %46 = tpu.concatenate %45, %44, %45 in 1 : vector<16x4xf32>, vector<16x32xf32>, vector<16x4xf32> -> vector<16x40xf32>
    %cst_12 = arith.constant 0.000000e+00 : f32
    %47 = vector.broadcast %cst_12 : f32 to vector<1x40xf32>
    %48 = vector.extract_strided_slice %46 {offsets = [0, 0], sizes = [8, 40], strides = [1, 1]} : vector<16x40xf32> to vector<8x40xf32>
    %49 = vector.extract_strided_slice %46 {offsets = [8, 0], sizes = [8, 40], strides = [1, 1]} : vector<16x40xf32> to vector<8x40xf32>
    %50 = tpu.concatenate %47, %48, %47, %47, %49, %47 in 0 : vector<1x40xf32>, vector<8x40xf32>, vector<1x40xf32>, vector<1x40xf32>, vector<8x40xf32>, vector<1x40xf32> -> vector<20x40xf32>
    %51 = vector.extract_strided_slice %50 {offsets = [0, 0], sizes = [8, 32], strides = [1, 1]} : vector<20x40xf32> to vector<8x32xf32>
    %52 = vector.extract_strided_slice %50 {offsets = [10, 0], sizes = [8, 32], strides = [1, 1]} : vector<20x40xf32> to vector<8x32xf32>
    %53 = tpu.concatenate %51, %52 in 0 : vector<8x32xf32>, vector<8x32xf32> -> vector<16x32xf32>
    %54 = vector.extract_strided_slice %50 {offsets = [0, 4], sizes = [8, 32], strides = [1, 1]} : vector<20x40xf32> to vector<8x32xf32>
    %55 = vector.extract_strided_slice %50 {offsets = [10, 4], sizes = [8, 32], strides = [1, 1]} : vector<20x40xf32> to vector<8x32xf32>
    %56 = tpu.concatenate %54, %55 in 0 : vector<8x32xf32>, vector<8x32xf32> -> vector<16x32xf32>
    %57 = vector.extract_strided_slice %50 {offsets = [0, 8], sizes = [8, 32], strides = [1, 1]} : vector<20x40xf32> to vector<8x32xf32>
    %58 = vector.extract_strided_slice %50 {offsets = [10, 8], sizes = [8, 32], strides = [1, 1]} : vector<20x40xf32> to vector<8x32xf32>
    %59 = tpu.concatenate %57, %58 in 0 : vector<8x32xf32>, vector<8x32xf32> -> vector<16x32xf32>
    %60 = vector.extract_strided_slice %50 {offsets = [1, 0], sizes = [8, 32], strides = [1, 1]} : vector<20x40xf32> to vector<8x32xf32>
    %61 = vector.extract_strided_slice %50 {offsets = [11, 0], sizes = [8, 32], strides = [1, 1]} : vector<20x40xf32> to vector<8x32xf32>
    %62 = tpu.concatenate %60, %61 in 0 : vector<8x32xf32>, vector<8x32xf32> -> vector<16x32xf32>
    %63 = vector.extract_strided_slice %50 {offsets = [1, 4], sizes = [8, 32], strides = [1, 1]} : vector<20x40xf32> to vector<8x32xf32>
    %64 = vector.extract_strided_slice %50 {offsets = [11, 4], sizes = [8, 32], strides = [1, 1]} : vector<20x40xf32> to vector<8x32xf32>
    %65 = tpu.concatenate %63, %64 in 0 : vector<8x32xf32>, vector<8x32xf32> -> vector<16x32xf32>
    %66 = vector.extract_strided_slice %50 {offsets = [1, 8], sizes = [8, 32], strides = [1, 1]} : vector<20x40xf32> to vector<8x32xf32>
    %67 = vector.extract_strided_slice %50 {offsets = [11, 8], sizes = [8, 32], strides = [1, 1]} : vector<20x40xf32> to vector<8x32xf32>
    %68 = tpu.concatenate %66, %67 in 0 : vector<8x32xf32>, vector<8x32xf32> -> vector<16x32xf32>
    %69 = vector.extract_strided_slice %50 {offsets = [2, 0], sizes = [8, 32], strides = [1, 1]} : vector<20x40xf32> to vector<8x32xf32>
    %70 = vector.extract_strided_slice %50 {offsets = [12, 0], sizes = [8, 32], strides = [1, 1]} : vector<20x40xf32> to vector<8x32xf32>
    %71 = tpu.concatenate %69, %70 in 0 : vector<8x32xf32>, vector<8x32xf32> -> vector<16x32xf32>
    %72 = vector.extract_strided_slice %50 {offsets = [2, 4], sizes = [8, 32], strides = [1, 1]} : vector<20x40xf32> to vector<8x32xf32>
    %73 = vector.extract_strided_slice %50 {offsets = [12, 4], sizes = [8, 32], strides = [1, 1]} : vector<20x40xf32> to vector<8x32xf32>
    %74 = tpu.concatenate %72, %73 in 0 : vector<8x32xf32>, vector<8x32xf32> -> vector<16x32xf32>
    %75 = vector.extract_strided_slice %50 {offsets = [2, 8], sizes = [8, 32], strides = [1, 1]} : vector<20x40xf32> to vector<8x32xf32>
    %76 = vector.extract_strided_slice %50 {offsets = [12, 8], sizes = [8, 32], strides = [1, 1]} : vector<20x40xf32> to vector<8x32xf32>
    %77 = tpu.concatenate %75, %76 in 0 : vector<8x32xf32>, vector<8x32xf32> -> vector<16x32xf32>
    %78 = tpu.concatenate %53, %56, %59, %62, %65, %68, %71, %74, %77 in 1 : vector<16x32xf32>, vector<16x32xf32>, vector<16x32xf32>, vector<16x32xf32>, vector<16x32xf32>, vector<16x32xf32>, vector<16x32xf32>, vector<16x32xf32>, vector<16x32xf32> -> vector<16x288xf32>
    %c0_13 = arith.constant 0 : index
    %c64 = arith.constant 64 : index
    %79 = vector.load %arg2[%c0_13, %c64] : memref<288x160xf32, #tpu.memory_space<vmem>>, vector<288x64xf32>
    %cst_14 = arith.constant dense<0.000000e+00> : vector<16x64xf32>
    %80 = tpu.matmul %78, %79, %cst_14 {dimension_numbers = #tpu.dot_dimension_numbers<[1], [0], [0], [1], [0, 0, 1, 1], [], []>} : vector<16x288xf32>, vector<288x64xf32>, vector<16x64xf32> -> vector<16x64xf32>
    %c0_15 = arith.constant 0 : index
    %c64_16 = arith.constant 64 : index
    %81 = vector.load %arg3[%c0_15, %c64_16] : memref<1x160xf32, #tpu.memory_space<vmem>>, vector<1x64xf32>
    %82 = vector.broadcast %81 : vector<1x64xf32> to vector<16x64xf32>
    %83 = arith.addf %80, %82 : vector<16x64xf32>
    %84 = vector.extract_strided_slice %83 {offsets = [0, 0], sizes = [16, 32], strides = [1, 1]} : vector<16x64xf32> to vector<16x32xf32>
    %cst_17 = arith.constant 0.000000e+00 : f32
    %85 = vector.broadcast %cst_17 : f32 to vector<16x32xf32>
    %86 = arith.maximumf %84, %85 : vector<16x32xf32>
    %87 = vector.extract_strided_slice %83 {offsets = [0, 32], sizes = [16, 32], strides = [1, 1]} : vector<16x64xf32> to vector<16x32xf32>
    %cst_18 = arith.constant 0.000000e+00 : f32
    %88 = vector.broadcast %cst_18 : f32 to vector<16x4xf32>
    %89 = tpu.concatenate %88, %86, %88 in 1 : vector<16x4xf32>, vector<16x32xf32>, vector<16x4xf32> -> vector<16x40xf32>
    %cst_19 = arith.constant 0.000000e+00 : f32
    %90 = vector.broadcast %cst_19 : f32 to vector<1x40xf32>
    %91 = vector.extract_strided_slice %89 {offsets = [0, 0], sizes = [8, 40], strides = [1, 1]} : vector<16x40xf32> to vector<8x40xf32>
    %92 = vector.extract_strided_slice %89 {offsets = [8, 0], sizes = [8, 40], strides = [1, 1]} : vector<16x40xf32> to vector<8x40xf32>
    %93 = tpu.concatenate %90, %91, %90, %90, %92, %90 in 0 : vector<1x40xf32>, vector<8x40xf32>, vector<1x40xf32>, vector<1x40xf32>, vector<8x40xf32>, vector<1x40xf32> -> vector<20x40xf32>
    %94 = vector.extract_strided_slice %93 {offsets = [0, 0], sizes = [8, 32], strides = [1, 1]} : vector<20x40xf32> to vector<8x32xf32>
    %95 = vector.extract_strided_slice %93 {offsets = [10, 0], sizes = [8, 32], strides = [1, 1]} : vector<20x40xf32> to vector<8x32xf32>
    %96 = tpu.concatenate %94, %95 in 0 : vector<8x32xf32>, vector<8x32xf32> -> vector<16x32xf32>
    %97 = vector.extract_strided_slice %93 {offsets = [0, 4], sizes = [8, 32], strides = [1, 1]} : vector<20x40xf32> to vector<8x32xf32>
    %98 = vector.extract_strided_slice %93 {offsets = [10, 4], sizes = [8, 32], strides = [1, 1]} : vector<20x40xf32> to vector<8x32xf32>
    %99 = tpu.concatenate %97, %98 in 0 : vector<8x32xf32>, vector<8x32xf32> -> vector<16x32xf32>
    %100 = vector.extract_strided_slice %93 {offsets = [0, 8], sizes = [8, 32], strides = [1, 1]} : vector<20x40xf32> to vector<8x32xf32>
    %101 = vector.extract_strided_slice %93 {offsets = [10, 8], sizes = [8, 32], strides = [1, 1]} : vector<20x40xf32> to vector<8x32xf32>
    %102 = tpu.concatenate %100, %101 in 0 : vector<8x32xf32>, vector<8x32xf32> -> vector<16x32xf32>
    %103 = vector.extract_strided_slice %93 {offsets = [1, 0], sizes = [8, 32], strides = [1, 1]} : vector<20x40xf32> to vector<8x32xf32>
    %104 = vector.extract_strided_slice %93 {offsets = [11, 0], sizes = [8, 32], strides = [1, 1]} : vector<20x40xf32> to vector<8x32xf32>
    %105 = tpu.concatenate %103, %104 in 0 : vector<8x32xf32>, vector<8x32xf32> -> vector<16x32xf32>
    %106 = vector.extract_strided_slice %93 {offsets = [1, 4], sizes = [8, 32], strides = [1, 1]} : vector<20x40xf32> to vector<8x32xf32>
    %107 = vector.extract_strided_slice %93 {offsets = [11, 4], sizes = [8, 32], strides = [1, 1]} : vector<20x40xf32> to vector<8x32xf32>
    %108 = tpu.concatenate %106, %107 in 0 : vector<8x32xf32>, vector<8x32xf32> -> vector<16x32xf32>
    %109 = vector.extract_strided_slice %93 {offsets = [1, 8], sizes = [8, 32], strides = [1, 1]} : vector<20x40xf32> to vector<8x32xf32>
    %110 = vector.extract_strided_slice %93 {offsets = [11, 8], sizes = [8, 32], strides = [1, 1]} : vector<20x40xf32> to vector<8x32xf32>
    %111 = tpu.concatenate %109, %110 in 0 : vector<8x32xf32>, vector<8x32xf32> -> vector<16x32xf32>
    %112 = vector.extract_strided_slice %93 {offsets = [2, 0], sizes = [8, 32], strides = [1, 1]} : vector<20x40xf32> to vector<8x32xf32>
    %113 = vector.extract_strided_slice %93 {offsets = [12, 0], sizes = [8, 32], strides = [1, 1]} : vector<20x40xf32> to vector<8x32xf32>
    %114 = tpu.concatenate %112, %113 in 0 : vector<8x32xf32>, vector<8x32xf32> -> vector<16x32xf32>
    %115 = vector.extract_strided_slice %93 {offsets = [2, 4], sizes = [8, 32], strides = [1, 1]} : vector<20x40xf32> to vector<8x32xf32>
    %116 = vector.extract_strided_slice %93 {offsets = [12, 4], sizes = [8, 32], strides = [1, 1]} : vector<20x40xf32> to vector<8x32xf32>
    %117 = tpu.concatenate %115, %116 in 0 : vector<8x32xf32>, vector<8x32xf32> -> vector<16x32xf32>
    %118 = vector.extract_strided_slice %93 {offsets = [2, 8], sizes = [8, 32], strides = [1, 1]} : vector<20x40xf32> to vector<8x32xf32>
    %119 = vector.extract_strided_slice %93 {offsets = [12, 8], sizes = [8, 32], strides = [1, 1]} : vector<20x40xf32> to vector<8x32xf32>
    %120 = tpu.concatenate %118, %119 in 0 : vector<8x32xf32>, vector<8x32xf32> -> vector<16x32xf32>
    %121 = tpu.concatenate %96, %99, %102, %105, %108, %111, %114, %117, %120 in 1 : vector<16x32xf32>, vector<16x32xf32>, vector<16x32xf32>, vector<16x32xf32>, vector<16x32xf32>, vector<16x32xf32>, vector<16x32xf32>, vector<16x32xf32>, vector<16x32xf32> -> vector<16x288xf32>
    %c0_20 = arith.constant 0 : index
    %c128 = arith.constant 128 : index
    %122 = vector.load %arg2[%c0_20, %c128] : memref<288x160xf32, #tpu.memory_space<vmem>>, vector<288x32xf32>
    %cst_21 = arith.constant dense<0.000000e+00> : vector<16x32xf32>
    %123 = tpu.matmul %121, %122, %cst_21 {dimension_numbers = #tpu.dot_dimension_numbers<[1], [0], [0], [1], [0, 0, 1, 1], [], []>} : vector<16x288xf32>, vector<288x32xf32>, vector<16x32xf32> -> vector<16x32xf32>
    %c0_22 = arith.constant 0 : index
    %c128_23 = arith.constant 128 : index
    %124 = vector.load %arg3[%c0_22, %c128_23] : memref<1x160xf32, #tpu.memory_space<vmem>>, vector<1x32xf32>
    %125 = vector.broadcast %124 : vector<1x32xf32> to vector<16x32xf32>
    %126 = arith.addf %123, %125 : vector<16x32xf32>
    %127 = arith.addf %126, %87 : vector<16x32xf32>
    %c0_24 = arith.constant 0 : index
    %c0_25 = arith.constant 0 : index
    %128 = vector.load %arg4[%c0_24, %c0_25] : memref<16x32xf32, #tpu.memory_space<vmem>>, vector<16x32xf32>
    tpu.vector_store %arg4[%c0_24, %c0_25], %127 {strides = array<i32>} : memref<16x32xf32, #tpu.memory_space<vmem>>, vector<16x32xf32>,
    return
  }
  func.func @transform_0(%arg0: i32) -> (i32, i32) {
    %c0_i32 = arith.constant 0 : i32
    %c0_i32_0 = arith.constant 0 : i32
    return %arg0, %c0_i32 : i32, i32
  }
  func.func @transform_1(%arg0: i32) -> (i32, i32) {
    %c0_i32 = arith.constant 0 : i32
    %c0_i32_0 = arith.constant 0 : i32
    %c0_i32_1 = arith.constant 0 : i32
    return %c0_i32, %c0_i32_0 : i32, i32
  }
  func.func @transform_2(%arg0: i32) -> (i32, i32) {
    %c0_i32 = arith.constant 0 : i32
    %c0_i32_0 = arith.constant 0 : i32
    %c0_i32_1 = arith.constant 0 : i32
    return %c0_i32, %c0_i32_0 : i32, i32
  }
  func.func @transform_3(%arg0: i32) -> (i32, i32) {
    %c0_i32 = arith.constant 0 : i32
    %c0_i32_0 = arith.constant 0 : i32
    return %arg0, %c0_i32 : i32, i32
  }
}

</mosaic_0001>

<bundles_post_ra>
// kernel: tile.39
= control target key start
LH: loop header
LB: loop body
LE: loop exit
PB: predicated region body
PF: predicated region fallthrough
CT: control target
= control target key end

     0   :  { %s69_s10 = smov 28   ;;  %s70_s11 = smov 20   ;;  %vm3_vm0 = vcmask 31744   ;;  %vm9_vm1 = vcmask 261344   ;;  %vm15_vm2 = vcmask 228544   ;;  %vm21_vm3 = vcmask 195744   ;;  %s113_s0 = inlined_call_operand.vmem [shape: f32[8,4], index: 0, kind: input, shape index: {}]   ;;  %s114_s1 = inlined_call_operand.vmem [shape: f32[32], index: 1, kind: output, shape index: {}]  }
   0x1   :  { %v55_v0 = vld [vmem:[%s113_s0 + $0x7] sm:$0x1]   ;;  %v57_v1 = vld [vmem:[%s113_s0 + $0x5] sm:$0x1]   ;;  %v56_v2 = vld [vmem:[%s113_s0 + $0x6] sm:$0x1]  }
   0x2   :  { %7 = vrot.lane.b32.xlu0 %v55_v0, %s69_s10  ;;  %19 = vrot.lane.b32.xlu1 %v57_v1, %s70_s11  ;;  %v58_v3 = vld [vmem:[%s113_s0 + $0x4] sm:$0x1]   ;;  %v2_v4 = vld [vmem:[%s113_s0] sm:$0x1]   ;;  %s71_s18 = smov 24   ;;  %s72_s19 = smov 16  }
   0x3   :  { %4 = vst.msk [vmem:[#allocation0] sm:$0x1] %vm3_vm0, %v2_v4   ;;  %v59_v5 = vld [vmem:[%s113_s0 + $0x3] sm:$0x1]   ;;  %v60_v6 = vld [vmem:[%s113_s0 + $0x2] sm:$0x1]  }
   0x4   :  { %s73_s24 = smov 12   ;;  %s74_s25 = smov 8   ;;  %v61_v7 = vld [vmem:[%s113_s0 + $0x1] sm:$0x1]   ;;  %vm27_vm4 = vcmask 162944   ;;  %vm33_vm5 = vcmask 130144  }
   0x5   :  { %s75_s0 = smov 4   ;;  %vm39_vm6 = vcmask 97344   ;;  %vm45_vm7 = vcmask 64544  }
   0x6   :  { %13 = vrot.lane.b32.xlu0 %v56_v2, %s71_s18  ;;  %25 = vrot.lane.b32.xlu1 %v58_v3, %s72_s19 }
   0xa   :  { %31 = vrot.lane.b32.xlu0 %v59_v5, %s73_s24  ;;  %37 = vrot.lane.b32.xlu1 %v60_v6, %s74_s25 }
   0xe   :  { %43 = vrot.lane.b32.xlu0 %v61_v7, %s75_s0 }
  0x74   :  { %v8_v8 = vpop.permute.xlu0 %7   ;;  %v20_v9 = vpop.permute.xlu1 %19  }
  0x75   :  { %10 = vst.msk [vmem:[#allocation0] sm:$0x1] %vm9_vm1, %v8_v8  }
  0x78   :  { %v14_v10 = vpop.permute.xlu0 %13   ;;  %v26_v11 = vpop.permute.xlu1 %25  }
  0x79   :  { %16 = vst.msk [vmem:[#allocation0] sm:$0x1] %vm15_vm2, %v14_v10  }
  0x7a   :  { %22 = vst.msk [vmem:[#allocation0] sm:$0x1] %vm21_vm3, %v20_v9  }
  0x7b   :  { %28 = vst.msk [vmem:[#allocation0] sm:$0x1] %vm27_vm4, %v26_v11  }
  0x7c   :  { %v32_v12 = vpop.permute.xlu0 %31   ;;  %v38_v13 = vpop.permute.xlu1 %37  }
  0x7d   :  { %34 = vst.msk [vmem:[#allocation0] sm:$0x1] %vm33_vm5, %v32_v12  }
  0x7e   :  { %40 = vst.msk [vmem:[#allocation0] sm:$0x1] %vm39_vm6, %v38_v13  }
  0x80   :  { %v44_v14 = vpop.permute.xlu0 %43  }
  0x81   :  { %46 = vst.msk [vmem:[#allocation0] sm:$0x1] %vm45_vm7, %v44_v14  }
  0x88   :  { %v51_v15 = vld [vmem:[#allocation0] sm:$0x1] }
  0x89   :  { %54 = vst [vmem:[%s114_s1] sm:$0x1] %v51_v15 }

// kernel: tile.38
= control target key start
LH: loop header
LB: loop body
LE: loop exit
PB: predicated region body
PF: predicated region fallthrough
CT: control target
= control target key end

     0   :  { %s22_s0 = inlined_call_operand.vmem [shape: f32[4], index: 0, kind: input, shape index: {}]   ;;  %s23_s1 = inlined_call_operand.vmem [shape: f32[8,4], index: 1, kind: output, shape index: {}]  }
   0x1   :  { %v4_v0 = vld [vmem:[%s22_s0] ss:$0 sm:$0xff] }
   0x2   :  { %5 = vst [vmem:[%s23_s1] sm:$0xff] %v4_v0 }

// kernel: resnet_block_forward.1
= control target key start
LH: loop header
LB: loop body
LE: loop exit
PB: predicated region body
PF: predicated region fallthrough
CT: control target
= control target key end

     0   :  { %s1643_s20 = smov 96   ;;  %vm63_vm0 = vcmask 261120   ;;  %s1644_s19 = smov 4   ;;  %vm228_vm1 = vcmask 31744   ;;  %vm231_vm2 = vcmask 293888   ;;  %vm240_vm3 = vcmask 1040384   ;;  %s2368_s1 = inlined_call_operand.vmem [shape: f32[288,160], index: 1, kind: input, shape index: {}]   ;;  %s2369_s0 = inlined_call_operand.vmem [shape: f32[16,288], index: 0, kind: input, shape index: {}]   ;;  %s2370_s2 = inlined_call_operand.vmem [shape: f32[1,160], index: 2, kind: input, shape index: {}]   ;;  %s2371_s3 = inlined_call_operand.vmem [shape: f32[16,32], index: 3, kind: output, shape index: {}]  }
   0x1   :  { %v1675_v0 = vld [vmem:[%s2368_s1 + $0x1f0] sm:$0xff]  ;;  %v1685_v2 = vld [vmem:[%s2368_s1 + $0x1e0] sm:$0xff]  ;;  %v15_v18 = vld [vmem:[%s2369_s0 + $0x8] sm:$0xff]  ;;  %vm243_vm4 = vcmask 1041408   ;;  %vm245_vm5 = vcmask 1042432   ;;  %vm256_vm6 = vcmask 1046528  }
   0x2   :  { %v1680_v1 = vld [vmem:[%s2368_s1 + $0xf0] sm:$0xff]  ;;  %1319 = vmatprep.subr.mxu0 %v1675_v0  ;;  %v1691_v3 = vld [vmem:[%s2368_s1 + $0xe0] sm:$0xff]  ;;  %428 = vrot.lane.b32.xlu1 %v1675_v0, %s1643_s20  ;;  %v19_v26 = vld [vmem:[%s2369_s0 + $0x28] sm:$0xff]  ;;  %vm260_vm7 = vcmask 1044480   ;;  %vm250_vm8 = vcmask 1045504   ;;  %vm266_vm9 = vcmask 1043456  }
   0x3   :  { %1320 = vmatpush3.msra.mxu0 %v1680_v1  ;;  %v1699_v4 = vld [vmem:[%s2368_s1 + $0x1d0] sm:$0xff]  ;;  %426 = vrot.lane.b32.xlu0 %v1685_v2, %s1643_s20  ;;  %v1713_v6 = vld [vmem:[%s2368_s1 + $0x1c0] sm:$0xff]  ;;  %v17_v41 = vld [vmem:[%s2369_s0 + $0x18] sm:$0xff]  ;;  %s1645_s21 = smov 24   ;;  %s1646_s22 = smov 124   ;;  %vm318_vm10 = vcmask 523264  }
   0x4   :  { %1321 = vmatprep.subr.mxu0 %v1685_v2  ;;  %v1707_v5 = vld [vmem:[%s2368_s1 + $0xd0] sm:$0xff]  ;;  %v1719_v7 = vld [vmem:[%s2368_s1 + $0xc0] sm:$0xff]  ;;  %134 = vmatprep.mubr.f32.mxu0 %v15_v18  ;;  %s1647_s23 = smov 64   ;;  %s1648_s24 = smov 28   ;;  %vm321_vm11 = vcmask 785408  }
   0x5   :  { %1322 = vmatpush3.msra.mxu0 %v1691_v3  ;;  %v1727_v8 = vld [vmem:[%s2368_s1 + $0x1b0] sm:$0xff]  ;;  %v1741_v10 = vld [vmem:[%s2368_s1 + $0x1a0] sm:$0xff]  ;;  %s1649_s25 = smov 56   ;;  %s1650_s26 = smov 92  }
   0x6   :  { %1323 = vmatprep.subr.mxu0 %v1699_v4  ;;  %396 = vrot.lane.b32.xlu1 %v1680_v1, %s1643_s20  ;;  %v1735_v9 = vld [vmem:[%s2368_s1 + $0xb0] sm:$0xff]  ;;  %v1747_v11 = vld [vmem:[%s2368_s1 + $0xa0] sm:$0xff]  ;;  %s1651_s27 = smov 120  }
   0x7   :  { %1324 = vmatpush3.msra.mxu0 %v1707_v5  ;;  %424 = vrot.lane.b32.xlu0 %v1699_v4, %s1643_s20  ;;  %v1752_v12 = vld [vmem:[%s2368_s1 + $0x230] sm:$0xff]  ;;  %v1766_v14 = vld [vmem:[%s2368_s1 + $0x220] sm:$0xff] }
   0x8   :  { %1325 = vmatprep.subr.mxu0 %v1713_v6  ;;  %v1760_v13 = vld [vmem:[%s2368_s1 + $0x190] sm:$0xff]  ;;  %1495 = vmatprep.subr.mxu1 %v1752_v12  ;;  %v1784_v17 = vld [vmem:[%s2368_s1 + $0x180] sm:$0xff] }
   0x9   :  { %1326 = vmatpush3.msra.mxu0 %v1719_v7  ;;  %v1772_v15 = vld [vmem:[%s2368_s1 + $0x90] sm:$0xff]  ;;  %1496 = vmatpush3.msra.mxu1 %v1752_v12  ;;  %v1794_v19 = vld [vmem:[%s2368_s1 + $0x80] sm:$0xff] }
   0xa   :  { %1327 = vmatprep.subr.mxu0 %v1727_v8  ;;  %394 = vrot.lane.b32.xlu1 %v1691_v3, %s1643_s20  ;;  %v1778_v16 = vld [vmem:[%s2368_s1 + $0x210] sm:$0xff]  ;;  %v1807_v21 = vld [vmem:[%s2368_s1 + $0x200] sm:$0xff] }
   0xb   :  { %1328 = vmatpush3.msra.mxu0 %v1735_v9  ;;  %1497 = vmatprep.subr.mxu1 %v1766_v14  ;;  %v1801_v20 = vld [vmem:[%s2368_s1 + $0x170] sm:$0xff]  ;;  %v1819_v23 = vld [vmem:[%s2368_s1 + $0x160] sm:$0xff] }
   0xc   :  { %1329 = vmatprep.subr.mxu0 %v1741_v10  ;;  %1498 = vmatpush3.msra.mxu1 %v1766_v14  ;;  %v1813_v22 = vld [vmem:[%s2368_s1 + $0x70] sm:$0xff]  ;;  %v1829_v25 = vld [vmem:[%s2368_s1 + $0x60] sm:$0xff] }
   0xd   :  { %1330 = vmatpush3.msra.mxu0 %v1747_v11  ;;  %1499 = vmatprep.subr.mxu1 %v1778_v16  ;;  %v16_v24 = vld [vmem:[%s2369_s0 + $0x10] sm:$0xff]  ;;  %v1853_v29 = vld [vmem:[%s2368_s1 + $0x140] sm:$0xff] }
   0xe   :  { %1331 = vmatprep.subr.mxu0 %v1760_v13  ;;  %1500 = vmatpush3.msra.mxu1 %v1778_v16  ;;  %v1839_v27 = vld [vmem:[%s2368_s1 + $0x150] sm:$0xff]  ;;  %v1860_v30 = vld [vmem:[%s2368_s1 + $0x40] sm:$0xff] }
   0xf   :  { %1332 = vmatpush3.msra.mxu0 %v1772_v15  ;;  %1501 = vmatprep.subr.mxu1 %v1807_v21  ;;  %v1846_v28 = vld [vmem:[%s2368_s1 + $0x50] sm:$0xff]  ;;  %v1882_v33 = vld [vmem:[%s2368_s1 + $0x120] sm:$0xff] }
  0x10   :  { %1333 = vmatprep.subr.mxu0 %v1784_v17  ;;  %1502 = vmatpush3.msra.mxu1 %v1807_v21  ;;  %v1868_v31 = vld [vmem:[%s2368_s1 + $0x130] sm:$0xff]  ;;  %v1888_v34 = vld [vmem:[%s2368_s1 + $0x20] sm:$0xff] }
  0x11   :  { %1334 = vmatpush3.msra.mxu0 %v1794_v19  ;;  %1503 = vmatprep.mubr.msk.f32.mxu1 %vm63_vm0, %v16_v24  ;;  %v1876_v32 = vld [vmem:[%s2368_s1 + $0x30] sm:$0xff]  ;;  %v1908_v37 = vld [vmem:[%s2368_s1 + $0x100] sm:$0xff] }
  0x12   :  { %1335 = vmatprep.subr.mxu0 %v1801_v20  ;;  %1504 = vmatmul.mubr.msk.f32.vlgmr.msra.gmra.mxu1 %vm63_vm0, %v19_v26  ;;  %v1896_v35 = vld [vmem:[%s2368_s1 + $0x110] sm:$0xff]  ;;  %v1914_v38 = vld [vmem:[%s2368_s1] sm:$0xff] }
  0x13   :  { %1336 = vmatpush3.msra.mxu0 %v1813_v22  ;;  %392 = vrot.lane.b32.xlu1 %v1707_v5, %s1643_s20  ;;  %v1902_v36 = vld [vmem:[%s2368_s1 + $0x10] sm:$0xff]  ;;  %2373 = vst [vmem:[#allocation2_spill] sm:$0xff] %v1914_v38  ;;  %v14_v39 = vld [vmem:[%s2369_s0] sm:$0xff] }
  0x14   :  { %1337 = vmatprep.subr.mxu0 %v1819_v23  ;;  %422 = vrot.lane.b32.xlu0 %v1713_v6, %s1643_s20  ;;  %v18_v40 = vld [vmem:[%s2369_s0 + $0x20] sm:$0xff] }
  0x15   :  { %1338 = vmatpush3.msra.mxu0 %v1829_v25  ;;  %v1957_v52 = vld [vmem:[%s2370_s2] ss:$0 sm:$0xff] }
  0x16   :  { %1339 = vmatprep.subr.mxu0 %v1839_v27 }
  0x17   :  { %1340 = vmatpush3.msra.mxu0 %v1846_v28  ;;  %390 = vrot.lane.b32.xlu1 %v1719_v7, %s1643_s20 }
  0x18   :  { %1341 = vmatprep.subr.mxu0 %v1853_v29 }
  0x19   :  { %1342 = vmatpush3.msra.mxu0 %v1860_v30 }
  0x1a   :  { %1343 = vmatprep.subr.mxu0 %v1868_v31 }
  0x1b   :  { %1344 = vmatpush3.msra.mxu0 %v1876_v32  ;;  %388 = vrot.lane.b32.xlu1 %v1735_v9, %s1643_s20 }
  0x1c   :  { %1345 = vmatprep.subr.mxu0 %v1882_v33 }
  0x1d   :  { %1346 = vmatpush3.msra.mxu0 %v1888_v34 }
  0x1e   :  { %1347 = vmatprep.subr.mxu0 %v1896_v35 }
  0x1f   :  { %1348 = vmatpush3.msra.mxu0 %v1902_v36  ;;  %386 = vrot.lane.b32.xlu1 %v1747_v11, %s1643_s20 }
  0x20   :  { %1349 = vmatprep.subr.mxu0 %v1908_v37 }
  0x21   :  { %1350 = vmatpush3.msra.mxu0 %v1914_v38 }
  0x22   :  { %135 = vmatmul.mubr.f32.vlgmr.msra.gmra.mxu0 %v14_v39 }
  0x23   :  { %139 = vmatprep.mubr.f32.mxu0 %v18_v40  ;;  %384 = vrot.lane.b32.xlu1 %v1772_v15, %s1643_s20 }
  0x26   :  { %140 = vmatmul.mubr.f32.gmra.mxu0 %v17_v41 }
  0x27   :  { %382 = vrot.lane.b32.xlu1 %v1794_v19, %s1643_s20 }
  0x2b   :  { %380 = vrot.lane.b32.xlu1 %v1813_v22, %s1643_s20 }
  0x2f   :  { %378 = vrot.lane.b32.xlu1 %v1829_v25, %s1643_s20 }
  0x33   :  { %376 = vrot.lane.b32.xlu1 %v1846_v28, %s1643_s20 }
  0x37   :  { %374 = vrot.lane.b32.xlu1 %v1860_v30, %s1643_s20 }
  0x3b   :  { %372 = vrot.lane.b32.xlu1 %v1876_v32, %s1643_s20 }
  0x3f   :  { %370 = vrot.lane.b32.xlu1 %v1888_v34, %s1643_s20 }
  0x43   :  { %368 = vrot.lane.b32.xlu1 %v1902_v36, %s1643_s20 }
  0x47   :  { %436 = vrot.lane.b32.xlu1 %v1752_v12, %s1643_s20 }
  0x4b   :  { %366 = vrot.lane.b32.xlu1 %v1914_v38, %s1643_s20 }
  0x74   :  { %v429_v42 = vpop.permute.xlu1 %428 }
  0x75   :  { %1363 = vmatprep.subr.mxu1 %v429_v42  ;;  %v427_v44 = vpop.permute.xlu0 %426 }
  0x78   :  { %v397_v43 = vpop.permute.xlu1 %396 }
  0x79   :  { %1364 = vmatpush3.msra.mxu1 %v397_v43  ;;  %v425_v46 = vpop.permute.xlu0 %424 }
  0x7a   :  { %1365 = vmatprep.subr.mxu1 %v427_v44 }
  0x7c   :  { %v395_v45 = vpop.permute.xlu1 %394 }
  0x7d   :  { %1366 = vmatpush3.msra.mxu1 %v395_v45 }
  0x7e   :  { %1367 = vmatprep.subr.mxu1 %v425_v46 }
  0x85   :  { %v393_v47 = vpop.permute.xlu1 %392 }
  0x86   :  { %v423_v48 = vpop.permute.xlu0 %422  ;;  %1368 = vmatpush3.msra.mxu1 %v393_v47 }
  0x87   :  { %1369 = vmatprep.subr.mxu1 %v423_v48 }
  0x89   :  { %v391_v62 = vpop.permute.xlu1 %390 }
  0x8a   :  { %1370 = vmatpush3.msra.mxu1 %v391_v62 }
  0x8d   :  { %v389_v63 = vpop.permute.xlu1 %388 }
  0x91   :  { %v387_v18 = vpop.permute.xlu1 %386 }
  0x95   :  { %v1977_v24 = vpop.permute.xlu1 %384 }
  0x99   :  { %v1981_v26 = vpop.permute.xlu1 %382 }
  0x9d   :  { %v1985_v39 = vpop.permute.xlu1 %380 }
  0xa1   :  { %v1989_v40 = vpop.permute.xlu1 %378 }
  0xa5   :  { %v1993_v41 = vpop.permute.xlu1 %376 }
  0xa9   :  { %v1997_v42 = vpop.permute.xlu1 %374 }
  0xad   :  { %v2001_v43 = vpop.permute.xlu1 %372 }
  0xb1   :  { %v2003_v44 = vpop.permute.xlu1 %370 }
  0xb5   :  { %v2005_v45 = vpop.permute.xlu1 %368 }
  0xb9   :  { %v437_v46 = vpop.permute.xlu1 %436 }
  0xba   :  { %1506 = vmatprep.subr.mxu0 %v437_v46 }
  0xbb   :  { %1507 = vmatpush3.msra.mxu0 %v437_v46 }
  0xd2   :  { %v1505_v51 = vpop.f32.mrf.mxu1 }
  0xd4   :  { %v211_v56 = vpop.f32.mrf.mxu1 }
  0xe2   :  { %v1351_v49 = vpop.f32.mrf.mxu0 }
  0xe4   :  { %v1352_v50 = vpop.f32.mrf.mxu0 }
  0xe5   :  { %v1353_v53 = vadd.f32 %v1352_v50, %v1351_v49 }
  0xe6   :  { %v1354_v54 = vpop.f32.mrf.mxu0 }
  0xe7   :  { %v137_v55 = vadd.f32 %v1353_v53, %v1957_v52 }
  0xe8   :  { %v1355_v57 = vpop.f32.mrf.mxu0 }
  0xe9   :  { %v212_v58 = vadd.f32 %v211_v56, %v137_v55  ;;  %v1356_v59 = vadd.f32 %v1355_v57, %v1354_v54 }
  0xeb   :  { %v142_v60 = vadd.f32 %v1356_v59, %v1957_v52  ;;  %222 = vrot.lane.b32.xlu0 %v212_v58, %s1644_s19 }
  0xed   :  { %v217_v61 = vadd.f32 %v1505_v51, %v142_v60 }
  0xef   :  { %224 = vrot.lane.b32.xlu0 %v217_v61, %s1644_s19 }
  0xf3   :  { %420 = vrot.lane.b32.xlu0 %v1727_v8, %s1643_s20 }
  0xf7   :  { %418 = vrot.lane.b32.xlu0 %v1741_v10, %s1643_s20 }
  0xfb   :  { %416 = vrot.lane.b32.xlu0 %v1760_v13, %s1643_s20 }
  0xff   :  { %414 = vrot.lane.b32.xlu0 %v1784_v17, %s1643_s20 }
 0x103   :  { %412 = vrot.lane.b32.xlu0 %v1801_v20, %s1643_s20 }
 0x107   :  { %410 = vrot.lane.b32.xlu0 %v1819_v23, %s1643_s20 }
 0x10b   :  { %408 = vrot.lane.b32.xlu0 %v1839_v27, %s1643_s20 }
 0x10f   :  { %406 = vrot.lane.b32.xlu0 %v1853_v29, %s1643_s20 }
 0x113   :  { %404 = vrot.lane.b32.xlu0 %v1868_v31, %s1643_s20 }
 0x117   :  { %402 = vrot.lane.b32.xlu0 %v1882_v33, %s1643_s20 }
 0x11b   :  { %400 = vrot.lane.b32.xlu0 %v1896_v35, %s1643_s20 }
 0x11f   :  { %398 = vrot.lane.b32.xlu0 %v1908_v37, %s1643_s20 }
 0x123   :  { %434 = vrot.lane.b32.xlu0 %v1766_v14, %s1643_s20 }
 0x15d   :  { %v223_v47 = vpop.permute.xlu0 %222 }
 0x15e   :  { %v229_v48 = vsel %vm228_vm1, 0.0, %v223_v47 }
 0x15f   :  { %v232_v49 = vsel %vm231_vm2, %v229_v48, 0.0 }
 0x160   :  { %v235_v50 = vrot.slane %v232_v49, 7 }
 0x161   :  { %v225_v51 = vpop.permute.xlu0 %224 }
 0x162   :  { %v242_v53 = vsel %vm240_vm3, %v235_v50, 0.0  ;;  %v230_v54 = vsel %vm228_vm1, 0.0, %v225_v51  ;;  %v2013_v56 = vsel %vm240_vm3, 0.0, %v235_v50 }
 0x163   :  { %v233_v55 = vsel %vm231_vm2, %v230_v54, 0.0  ;;  %v244_v58 = vsel %vm243_vm4, %v242_v53, 0.0  ;;  %v257_v47 = vrot.slane %v2013_v56, 1 }
 0x164   :  { %v238_v57 = vrot.slane %v233_v55, 5 }
 0x165   :  { %v421_v59 = vpop.permute.xlu0 %420 }
 0x166   :  { %v246_v60 = vsel %vm245_vm5, %v244_v58, %v238_v57  ;;  %v247_v61 = vsel %vm245_vm5, %v238_v57, 0.0  ;;  %1371 = vmatprep.subr.mxu1 %v421_v59  ;;  %v264_v58 = vrot.slane %v2013_v56, 2 }
 0x167   :  { %v252_v62 = vrot.slane %v247_v61, 2  ;;  %v262_v46 = vrot.slane %v247_v61, 3  ;;  %v258_v48 = vrot.slane %v246_v60, 1  ;;  %1372 = vmatpush3.msra.mxu1 %v389_v63  ;;  %v268_v49 = vrot.slane %v247_v61, 4 }
 0x168   :  { %v261_v50 = vrot.slane %v246_v60, 3  ;;  %v251_v51 = vrot.slane %v246_v60, 2  ;;  %v267_v54 = vrot.slane %v246_v60, 4 }
 0x169   :  { %v259_v53 = vsel %vm256_vm6, %v257_v47, %v258_v48  ;;  %v419_v55 = vpop.permute.xlu0 %418 }
 0x16a   :  { %v263_v57 = vsel %vm260_vm7, %v261_v50, %v262_v46  ;;  %1373 = vmatprep.subr.mxu1 %v419_v55  ;;  %v265_v38 = vsel %vm250_vm8, %v264_v58, %v251_v51  ;;  %v269_v63 = vsel %vm266_vm9, %v267_v54, %v268_v49  ;;  %v2025_v61 = vsel %vm250_vm8, %v251_v51, %v252_v62 }
 0x16b   :  { %v1553_v59 = vpack.i.bf16 %v263_v57, %v259_v53  ;;  %1374 = vmatpush3.msra.mxu1 %v387_v18  ;;  %v1563_v46 = vpack.i.bf16 %v269_v63, %v265_v38  ;;  %v1558_v47 = vpack.i.bf16 %v2025_v61, %v2013_v56 }
 0x16d   :  { %1554 = vrot.lane.b32.xlu1 %v1553_v59, %s1645_s21  ;;  %1549 = vrot.lane.b32.xlu0 %v1553_v59, %s1646_s22  ;;  %v417_v60 = vpop.permute.xlu0 %416 }
 0x16e   :  { %1375 = vmatprep.subr.mxu1 %v417_v60 }
 0x16f   :  { %1376 = vmatpush3.msra.mxu1 %v1977_v24 }
 0x171   :  { %1564 = vrot.lane.b32.xlu0 %v1563_v46, %s1647_s23  ;;  %1559 = vrot.lane.b32.xlu1 %v1558_v47, %s1648_s24  ;;  %v415_v18 = vpop.permute.xlu0 %414 }
 0x172   :  { %1377 = vmatprep.subr.mxu1 %v415_v18 }
 0x173   :  { %1378 = vmatpush3.msra.mxu1 %v1981_v26 }
 0x175   :  { %1569 = vrot.lane.b32.xlu0 %v1558_v47, %s1649_s25  ;;  %1574 = vrot.lane.b32.xlu1 %v1563_v46, %s1650_s26  ;;  %v413_v62 = vpop.permute.xlu0 %412 }
 0x176   :  { %1379 = vmatprep.subr.mxu1 %v413_v62 }
 0x177   :  { %1380 = vmatpush3.msra.mxu1 %v1985_v39 }
 0x179   :  { %1579 = vrot.lane.b32.xlu0 %v1553_v59, %s1643_s20  ;;  %432 = vrot.lane.b32.xlu1 %v1778_v16, %s1643_s20  ;;  %v411_v24 = vpop.permute.xlu0 %410 }
 0x17a   :  { %1381 = vmatprep.subr.mxu1 %v411_v24 }
 0x17b   :  { %1382 = vmatpush3.msra.mxu1 %v1989_v40 }
 0x17d   :  { %430 = vrot.lane.b32.xlu0 %v1807_v21, %s1643_s20  ;;  %312 = vrot.lane.b32.xlu1 %v265_v38, %s1651_s27  ;;  %v409_v26 = vpop.permute.xlu0 %408 }
 0x17e   :  { %1383 = vmatprep.subr.mxu1 %v409_v26 }
 0x17f   :  { %1384 = vmatpush3.msra.mxu1 %v1993_v41 }
 0x181   :  { %314 = vrot.lane.b32.xlu0 %v269_v63, %s1651_s27  ;;  %v407_v39 = vpop.permute.xlu0 %406  ;;  %474 = vrot.lane.b32.xlu1 %v1957_v52, %s1643_s20 }
 0x182   :  { %1385 = vmatprep.subr.mxu1 %v407_v39 }
 0x183   :  { %1386 = vmatpush3.msra.mxu1 %v1997_v42 }
 0x185   :  { %v405_v40 = vpop.permute.xlu0 %404  ;;  %792 = vrot.lane.b32.xlu0 %v1675_v0, %s1647_s23  ;;  %760 = vrot.lane.b32.xlu1 %v1680_v1, %s1647_s23  ;;  %v367_v1 = vpop.permute.xlu1 %366 }
 0x186   :  { %1387 = vmatprep.subr.mxu1 %v405_v40 }
 0x187   :  { %1388 = vmatpush3.msra.mxu1 %v2001_v43 }
 0x189   :  { %v403_v38 = vpop.permute.xlu0 %402  ;;  %790 = vrot.lane.b32.xlu0 %v1685_v2, %s1647_s23  ;;  %758 = vrot.lane.b32.xlu1 %v1691_v3, %s1647_s23 }
 0x18a   :  { %1389 = vmatprep.subr.mxu1 %v403_v38 }
 0x18b   :  { %1390 = vmatpush3.msra.mxu1 %v2003_v44 }
 0x18d   :  { %v401_v41 = vpop.permute.xlu0 %400  ;;  %788 = vrot.lane.b32.xlu0 %v1699_v4, %s1647_s23  ;;  %756 = vrot.lane.b32.xlu1 %v1707_v5, %s1647_s23 }
 0x18e   :  { %1391 = vmatprep.subr.mxu1 %v401_v41 }
 0x18f   :  { %1392 = vmatpush3.msra.mxu1 %v2005_v45 }
 0x191   :  { %v399_v0 = vpop.permute.xlu0 %398 }
 0x192   :  { %1393 = vmatprep.subr.mxu1 %v399_v0 }
 0x193   :  { %1394 = vmatpush3.msra.mxu1 %v367_v1 }
 0x195   :  { %v435_v2 = vpop.permute.xlu0 %434 }
 0x196   :  { %1508 = vmatprep.subr.mxu0 %v435_v2 }
 0x197   :  { %1509 = vmatpush3.msra.mxu0 %v435_v2 }
 0x1df   :  { %v1555_v3 = vpop.permute.xlu1 %1554  ;;  %v1550_v42 = vpop.permute.xlu0 %1549 }
 0x1e0   :  { %v1556_v48 = vunpack.i.l.bf16 %v1555_v3  ;;  %v1551_v49 = vunpack.i.l.bf16 %v1550_v42  ;;  %v1557_v53 = vunpack.i.h.bf16 %v1555_v3  ;;  %v1552_v55 = vunpack.i.h.bf16 %v1550_v42 }
 0x1e2   :  { %v324_v54 = vsel %vm63_vm0, %v1551_v49, %v1556_v48  ;;  %v325_v40 = vsel %vm63_vm0, %v1552_v55, %v1557_v53 }
 0x1e3   :  { %v1560_v43 = vpop.permute.xlu1 %1559  ;;  %v1565_v44 = vpop.permute.xlu0 %1564 }
 0x1e4   :  { %v1566_v4 = vunpack.i.l.bf16 %v1565_v44  ;;  %v1561_v51 = vunpack.i.l.bf16 %v1560_v43  ;;  %v1567_v59 = vunpack.i.h.bf16 %v1565_v44  ;;  %v1562_v18 = vunpack.i.h.bf16 %v1560_v43 }
 0x1e6   :  { %v326_v58 = vsel %vm318_vm10, %v324_v54, %v1566_v4  ;;  %v316_v62 = vsel %vm63_vm0, %v2013_v56, %v1561_v51  ;;  %v327_v0 = vsel %vm318_vm10, %v325_v40, %v1567_v59  ;;  %v317_v56 = vsel %vm63_vm0, %v2025_v61, %v1562_v18 }
 0x1e7   :  { %v1575_v50 = vpop.permute.xlu1 %1574  ;;  %v1570_v5 = vpop.permute.xlu0 %1569 }
 0x1e8   :  { %v1576_v45 = vunpack.i.l.bf16 %v1575_v50  ;;  %v1571_v57 = vunpack.i.l.bf16 %v1570_v5  ;;  %v1577_v60 = vunpack.i.h.bf16 %v1575_v50  ;;  %v1572_v26 = vunpack.i.h.bf16 %v1570_v5 }
 0x1ea   :  { %v328_v63 = vsel %vm321_vm11, %v326_v58, %v1576_v45  ;;  %v319_v39 = vsel %vm318_vm10, %v316_v62, %v1571_v57  ;;  %v329_v3 = vsel %vm321_vm11, %v327_v0, %v1577_v60  ;;  %v320_v42 = vsel %vm318_vm10, %v317_v56, %v1572_v26 }
 0x1eb   :  { %v433_v46 = vpop.permute.xlu1 %432  ;;  %v1580_v47 = vpop.permute.xlu0 %1579  ;;  %545 = vmatprep.mubr.f32.mxu1 %v328_v63 }
 0x1ec   :  { %v1581_v24 = vunpack.i.l.bf16 %v1580_v47  ;;  %1510 = vmatprep.subr.mxu0 %v433_v46  ;;  %v1582_v38 = vunpack.i.h.bf16 %v1580_v47 }
 0x1ed   :  { %1511 = vmatpush3.msra.mxu0 %v433_v46 }
 0x1ee   :  { %v322_v41 = vsel %vm321_vm11, %v319_v39, %v1581_v24  ;;  %v323_v43 = vsel %vm321_vm11, %v320_v42, %v1582_v38 }
 0x1ef   :  { %v313_v1 = vpop.permute.xlu1 %312  ;;  %v431_v2 = vpop.permute.xlu0 %430  ;;  %546 = vmatmul.mubr.f32.vlgmr.msra.gmra.mxu1 %v322_v41 }
 0x1f0   :  { %550 = vmatprep.mubr.f32.mxu1 %v329_v3  ;;  %1512 = vmatprep.subr.mxu0 %v431_v2 }
 0x1f1   :  { %1514 = vmatprep.mubr.msk.f32.mxu0 %vm63_vm0, %v313_v1  ;;  %1513 = vmatpush3.msra.mxu0 %v431_v2 }
 0x1f3   :  { %v315_v44 = vpop.permute.xlu0 %314  ;;  %551 = vmatmul.mubr.f32.gmra.mxu1 %v323_v43  ;;  %v475_v48 = vpop.permute.xlu1 %474 }
 0x1f4   :  { %1515 = vmatmul.mubr.msk.f32.vlgmr.msra.gmra.mxu0 %vm63_vm0, %v315_v44 }
 0x1f7   :  { %v793_v49 = vpop.permute.xlu0 %792  ;;  %v761_v4 = vpop.permute.xlu1 %760 }
 0x1f8   :  { %1407 = vmatprep.subr.mxu0 %v793_v49 }
 0x1f9   :  { %1408 = vmatpush3.msra.mxu0 %v761_v4 }
 0x1fb   :  { %v791_v50 = vpop.permute.xlu0 %790  ;;  %v759_v5 = vpop.permute.xlu1 %758 }
 0x1fc   :  { %1409 = vmatprep.subr.mxu0 %v791_v50 }
 0x1fd   :  { %1410 = vmatpush3.msra.mxu0 %v759_v5 }
 0x1ff   :  { %v789_v61 = vpop.permute.xlu0 %788  ;;  %v757_v51 = vpop.permute.xlu1 %756 }
 0x200   :  { %1411 = vmatprep.subr.mxu0 %v789_v61 }
 0x201   :  { %1412 = vmatpush3.msra.mxu0 %v757_v51 }
 0x2af   :  { %v1395_v45 = vpop.f32.mrf.mxu1 }
 0x2b1   :  { %v1396_v54 = vpop.f32.mrf.mxu1 }
 0x2b2   :  { %v1397_v53 = vadd.f32 %v1396_v54, %v1395_v45 }
 0x2b3   :  { %v1398_v55 = vpop.f32.mrf.mxu1 }
 0x2b4   :  { %v548_v57 = vadd.f32 %v1397_v53, %v475_v48  ;;  %v1516_v58 = vpop.f32.mrf.mxu0 }
 0x2b5   :  { %v1399_v59 = vpop.f32.mrf.mxu1 }
 0x2b6   :  { %v1400_v63 = vadd.f32 %v1399_v59, %v1398_v55  ;;  %v622_v60 = vpop.f32.mrf.mxu0 }
 0x2b7   :  { %v623_v46 = vadd.f32 %v622_v60, %v548_v57 }
 0x2b8   :  { %v553_v47 = vadd.f32 %v1400_v63, %v475_v48 }
 0x2b9   :  { %633 = vrot.lane.b32.xlu0 %v623_v46, %s1644_s19 }
 0x2ba   :  { %v628_v18 = vadd.f32 %v1516_v58, %v553_v47 }
 0x2bc   :  { %635 = vrot.lane.b32.xlu1 %v628_v18, %s1644_s19 }
 0x2bd   :  { %786 = vrot.lane.b32.xlu0 %v1713_v6, %s1647_s23  ;;  %v2374_v6 = vld [vmem:[#allocation2_spill] sm:$0xff] }
 0x2c0   :  { %754 = vrot.lane.b32.xlu1 %v1719_v7, %s1647_s23 }
 0x2c1   :  { %784 = vrot.lane.b32.xlu0 %v1727_v8, %s1647_s23 }
 0x2c4   :  { %752 = vrot.lane.b32.xlu1 %v1735_v9, %s1647_s23 }
 0x2c5   :  { %782 = vrot.lane.b32.xlu0 %v1741_v10, %s1647_s23 }
 0x2c8   :  { %750 = vrot.lane.b32.xlu1 %v1747_v11, %s1647_s23 }
 0x2c9   :  { %780 = vrot.lane.b32.xlu0 %v1760_v13, %s1647_s23 }
 0x2cc   :  { %748 = vrot.lane.b32.xlu1 %v1772_v15, %s1647_s23 }
 0x2cd   :  { %778 = vrot.lane.b32.xlu0 %v1784_v17, %s1647_s23 }
 0x2d0   :  { %746 = vrot.lane.b32.xlu1 %v1794_v19, %s1647_s23 }
 0x2d1   :  { %776 = vrot.lane.b32.xlu0 %v1801_v20, %s1647_s23 }
 0x2d4   :  { %744 = vrot.lane.b32.xlu1 %v1813_v22, %s1647_s23 }
 0x2d5   :  { %774 = vrot.lane.b32.xlu0 %v1819_v23, %s1647_s23 }
 0x2d8   :  { %742 = vrot.lane.b32.xlu1 %v1829_v25, %s1647_s23 }
 0x2d9   :  { %772 = vrot.lane.b32.xlu0 %v1839_v27, %s1647_s23 }
 0x2dc   :  { %740 = vrot.lane.b32.xlu1 %v1846_v28, %s1647_s23 }
 0x2dd   :  { %770 = vrot.lane.b32.xlu0 %v1853_v29, %s1647_s23 }
 0x2e0   :  { %738 = vrot.lane.b32.xlu1 %v1860_v30, %s1647_s23 }
 0x2e1   :  { %768 = vrot.lane.b32.xlu0 %v1868_v31, %s1647_s23 }
 0x2e4   :  { %736 = vrot.lane.b32.xlu1 %v1876_v32, %s1647_s23 }
 0x2e5   :  { %766 = vrot.lane.b32.xlu0 %v1882_v33, %s1647_s23 }
 0x2e8   :  { %734 = vrot.lane.b32.xlu1 %v1888_v34, %s1647_s23 }
 0x2e9   :  { %764 = vrot.lane.b32.xlu0 %v1896_v35, %s1647_s23 }
 0x2ec   :  { %732 = vrot.lane.b32.xlu1 %v1902_v36, %s1647_s23 }
 0x2ed   :  { %762 = vrot.lane.b32.xlu0 %v1908_v37, %s1647_s23 }
 0x2f0   :  { %800 = vrot.lane.b32.xlu1 %v1752_v12, %s1647_s23 }
 0x2f1   :  { %798 = vrot.lane.b32.xlu0 %v1766_v14, %s1647_s23 }
 0x2f4   :  { %730 = vrot.lane.b32.xlu1 %v2374_v6, %s1647_s23 }
 0x32b   :  { %v634_v7 = vpop.permute.xlu0 %633 }
 0x32c   :  { %v639_v8 = vsel %vm228_vm1, 0.0, %v634_v7 }
 0x32d   :  { %v641_v9 = vsel %vm231_vm2, %v639_v8, 0.0 }
 0x32e   :  { %v644_v10 = vrot.slane %v641_v9, 7  ;;  %v636_v11 = vpop.permute.xlu1 %635 }
 0x32f   :  { %v640_v13 = vsel %vm228_vm1, 0.0, %v636_v11  ;;  %v787_v15 = vpop.permute.xlu0 %786 }
 0x330   :  { %v650_v17 = vsel %vm240_vm3, %v644_v10, 0.0  ;;  %v642_v12 = vsel %vm231_vm2, %v640_v13, 0.0  ;;  %1413 = vmatprep.subr.mxu0 %v787_v15  ;;  %v2145_v14 = vsel %vm240_vm3, 0.0, %v644_v10 }
 0x331   :  { %v651_v19 = vsel %vm243_vm4, %v650_v17, 0.0  ;;  %v647_v20 = vrot.slane %v642_v12, 5  ;;  %v661_v28 = vrot.slane %v2145_v14, 1  ;;  %v667_v62 = vrot.slane %v2145_v14, 2 }
 0x332   :  { %v755_v22 = vpop.permute.xlu1 %754 }
 0x333   :  { %v652_v23 = vsel %vm245_vm5, %v651_v19, %v647_v20  ;;  %v653_v25 = vsel %vm245_vm5, %v647_v20, 0.0  ;;  %v785_v27 = vpop.permute.xlu0 %784  ;;  %1414 = vmatpush3.msra.mxu0 %v755_v22 }
 0x334   :  { %v656_v29 = vrot.slane %v652_v23, 2  ;;  %v662_v30 = vrot.slane %v652_v23, 1  ;;  %v664_v31 = vrot.slane %v652_v23, 3  ;;  %1415 = vmatprep.subr.mxu0 %v785_v27  ;;  %v657_v32 = vrot.slane %v653_v25, 2 }
 0x335   :  { %v665_v33 = vrot.slane %v653_v25, 3  ;;  %v669_v34 = vrot.slane %v652_v23, 4  ;;  %v670_v35 = vrot.slane %v653_v25, 4 }
 0x336   :  { %v663_v36 = vsel %vm256_vm6, %v661_v28, %v662_v30  ;;  %v753_v37 = vpop.permute.xlu1 %752  ;;  %v2155_v40 = vsel %vm250_vm8, %v656_v29, %v657_v32  ;;  %v668_v38 = vsel %vm250_vm8, %v667_v62, %v656_v29 }
 0x337   :  { %v666_v24 = vsel %vm260_vm7, %v664_v31, %v665_v33  ;;  %v783_v26 = vpop.permute.xlu0 %782  ;;  %1416 = vmatpush3.msra.mxu0 %v753_v37  ;;  %v671_v41 = vsel %vm266_vm9, %v669_v34, %v670_v35  ;;  %v1593_v2 = vpack.i.bf16 %v2155_v40, %v2145_v14 }
 0x338   :  { %v1588_v39 = vpack.i.bf16 %v666_v24, %v663_v36  ;;  %1417 = vmatprep.subr.mxu0 %v783_v26  ;;  %v1598_v3 = vpack.i.bf16 %v671_v41, %v668_v38 }
 0x33a   :  { %1589 = vrot.lane.b32.xlu1 %v1588_v39, %s1645_s21  ;;  %1584 = vrot.lane.b32.xlu0 %v1588_v39, %s1646_s22  ;;  %v751_v0 = vpop.permute.xlu1 %750 }
 0x33b   :  { %v781_v1 = vpop.permute.xlu0 %780  ;;  %1418 = vmatpush3.msra.mxu0 %v751_v0 }
 0x33c   :  { %1419 = vmatprep.subr.mxu0 %v781_v1 }
 0x33e   :  { %1594 = vrot.lane.b32.xlu1 %v1593_v2, %s1648_s24  ;;  %1599 = vrot.lane.b32.xlu0 %v1598_v3, %s1647_s23  ;;  %v749_v56 = vpop.permute.xlu1 %748 }
 0x33f   :  { %v779_v42 = vpop.permute.xlu0 %778  ;;  %1420 = vmatpush3.msra.mxu0 %v749_v56 }
 0x340   :  { %1421 = vmatprep.subr.mxu0 %v779_v42 }
 0x342   :  { %1609 = vrot.lane.b32.xlu1 %v1598_v3, %s1650_s26  ;;  %1604 = vrot.lane.b32.xlu0 %v1593_v2, %s1649_s25  ;;  %v747_v43 = vpop.permute.xlu1 %746 }
 0x343   :  { %v777_v44 = vpop.permute.xlu0 %776  ;;  %1422 = vmatpush3.msra.mxu0 %v747_v43 }
 0x344   :  { %1423 = vmatprep.subr.mxu0 %v777_v44 }
 0x346   :  { %796 = vrot.lane.b32.xlu1 %v1778_v16, %s1647_s23  ;;  %1614 = vrot.lane.b32.xlu0 %v1588_v39, %s1643_s20  ;;  %v745_v48 = vpop.permute.xlu1 %744 }
 0x347   :  { %v775_v49 = vpop.permute.xlu0 %774  ;;  %1424 = vmatpush3.msra.mxu0 %v745_v48 }
 0x348   :  { %1425 = vmatprep.subr.mxu0 %v775_v49 }
 0x34a   :  { %714 = vrot.lane.b32.xlu1 %v668_v38, %s1651_s27  ;;  %794 = vrot.lane.b32.xlu0 %v1807_v21, %s1647_s23  ;;  %v743_v4 = vpop.permute.xlu1 %742 }
 0x34b   :  { %v773_v50 = vpop.permute.xlu0 %772  ;;  %1426 = vmatpush3.msra.mxu0 %v743_v4 }
 0x34c   :  { %1427 = vmatprep.subr.mxu0 %v773_v50 }
 0x34e   :  { %716 = vrot.lane.b32.xlu0 %v671_v41, %s1651_s27  ;;  %v741_v5 = vpop.permute.xlu1 %740  ;;  %838 = vrot.lane.b32.xlu1 %v1957_v52, %s1647_s23 }
 0x34f   :  { %v771_v16 = vpop.permute.xlu0 %770  ;;  %1428 = vmatpush3.msra.mxu0 %v741_v5 }
 0x350   :  { %1429 = vmatprep.subr.mxu0 %v771_v16  ;;  %v1127_v16 = vld [vmem:[%s2368_s1 + $0x1f8] sm:$0xff] }
 0x352   :  { %v739_v61 = vpop.permute.xlu1 %738 }
 0x353   :  { %v769_v51 = vpop.permute.xlu0 %768  ;;  %1430 = vmatpush3.msra.mxu0 %v739_v61  ;;  %v1111_v61 = vld [vmem:[%s2368_s1 + $0xf8] sm:$0xff] }
 0x354   :  { %1431 = vmatprep.subr.mxu0 %v769_v51  ;;  %v1126_v51 = vld [vmem:[%s2368_s1 + $0x1e8] sm:$0xff] }
 0x356   :  { %v737_v45 = vpop.permute.xlu1 %736 }
 0x357   :  { %v767_v54 = vpop.permute.xlu0 %766  ;;  %1432 = vmatpush3.msra.mxu0 %v737_v45  ;;  %v1110_v45 = vld [vmem:[%s2368_s1 + $0xe8] sm:$0xff] }
 0x358   :  { %1433 = vmatprep.subr.mxu0 %v767_v54  ;;  %v1125_v54 = vld [vmem:[%s2368_s1 + $0x1d8] sm:$0xff] }
 0x35a   :  { %v735_v21 = vpop.permute.xlu1 %734 }
 0x35b   :  { %v765_v53 = vpop.permute.xlu0 %764  ;;  %1434 = vmatpush3.msra.mxu0 %v735_v21  ;;  %v1109_v21 = vld [vmem:[%s2368_s1 + $0xd8] sm:$0xff] }
 0x35c   :  { %1435 = vmatprep.subr.mxu0 %v765_v53  ;;  %v1124_v53 = vld [vmem:[%s2368_s1 + $0x1c8] sm:$0xff] }
 0x35e   :  { %v733_v55 = vpop.permute.xlu1 %732 }
 0x35f   :  { %v763_v57 = vpop.permute.xlu0 %762  ;;  %1436 = vmatpush3.msra.mxu0 %v733_v55  ;;  %v1108_v55 = vld [vmem:[%s2368_s1 + $0xc8] sm:$0xff] }
 0x360   :  { %1437 = vmatprep.subr.mxu0 %v763_v57  ;;  %v1123_v57 = vld [vmem:[%s2368_s1 + $0x1b8] sm:$0xff] }
 0x362   :  { %v801_v52 = vpop.permute.xlu1 %800 }
 0x363   :  { %1517 = vmatprep.subr.mxu1 %v801_v52  ;;  %v799_v58 = vpop.permute.xlu0 %798 }
 0x364   :  { %1518 = vmatpush3.msra.mxu1 %v801_v52  ;;  %v1107_v52 = vld [vmem:[%s2368_s1 + $0xb8] sm:$0xff] }
 0x365   :  { %1519 = vmatprep.subr.mxu1 %v799_v58 }
 0x366   :  { %v731_v59 = vpop.permute.xlu1 %730  ;;  %1520 = vmatpush3.msra.mxu1 %v799_v58  ;;  %v1122_v58 = vld [vmem:[%s2368_s1 + $0x1a8] sm:$0xff] }
 0x367   :  { %1438 = vmatpush3.msra.mxu0 %v731_v59  ;;  %v1106_v59 = vld [vmem:[%s2368_s1 + $0xa8] sm:$0xff] }
 0x3ac   :  { %v1590_v63 = vpop.permute.xlu1 %1589  ;;  %v1585_v60 = vpop.permute.xlu0 %1584 }
 0x3ad   :  { %v1591_v18 = vunpack.i.l.bf16 %v1590_v63  ;;  %v1586_v6 = vunpack.i.l.bf16 %v1585_v60  ;;  %v1592_v15 = vunpack.i.h.bf16 %v1590_v63  ;;  %v1587_v17 = vunpack.i.h.bf16 %v1585_v60  ;;  %v1121_v63 = vld [vmem:[%s2368_s1 + $0x198] sm:$0xff] }
 0x3ae   :  { %v1105_v60 = vld [vmem:[%s2368_s1 + $0x98] sm:$0xff] }
 0x3af   :  { %v724_v13 = vsel %vm63_vm0, %v1586_v6, %v1591_v18  ;;  %v725_v33 = vsel %vm63_vm0, %v1587_v17, %v1592_v15  ;;  %v1119_v18 = vld [vmem:[%s2368_s1 + $0x178] sm:$0xff]  ;;  %v1116_v17 = vld [vmem:[%s2368_s1 + $0x148] sm:$0xff] }
 0x3b0   :  { %v1595_v46 = vpop.permute.xlu1 %1594  ;;  %v1600_v47 = vpop.permute.xlu0 %1599  ;;  %v1103_v6 = vld [vmem:[%s2368_s1 + $0x78] sm:$0xff] }
 0x3b1   :  { %v1601_v7 = vunpack.i.l.bf16 %v1600_v47  ;;  %v1596_v10 = vunpack.i.l.bf16 %v1595_v46  ;;  %v1602_v20 = vunpack.i.h.bf16 %v1600_v47  ;;  %v1597_v28 = vunpack.i.h.bf16 %v1595_v46  ;;  %v1120_v46 = vld [vmem:[%s2368_s1 + $0x188] sm:$0xff]  ;;  %v1101_v15 = vld [vmem:[%s2368_s1 + $0x58] sm:$0xff] }
 0x3b2   :  { %v1104_v47 = vld [vmem:[%s2368_s1 + $0x88] sm:$0xff] }
 0x3b3   :  { %v726_v19 = vsel %vm318_vm10, %v724_v13, %v1601_v7  ;;  %v718_v29 = vsel %vm63_vm0, %v2145_v14, %v1596_v10  ;;  %v727_v36 = vsel %vm318_vm10, %v725_v33, %v1602_v20  ;;  %v719_v14 = vsel %vm63_vm0, %v2155_v40, %v1597_v28  ;;  %v1118_v7 = vld [vmem:[%s2368_s1 + $0x168] sm:$0xff]  ;;  %v1117_v13 = vld [vmem:[%s2368_s1 + $0x158] sm:$0xff] }
 0x3b4   :  { %v1610_v8 = vpop.permute.xlu1 %1609  ;;  %v1605_v9 = vpop.permute.xlu0 %1604  ;;  %v1102_v10 = vld [vmem:[%s2368_s1 + $0x68] sm:$0xff] }
 0x3b5   :  { %v1611_v11 = vunpack.i.l.bf16 %v1610_v8  ;;  %v1606_v12 = vunpack.i.l.bf16 %v1605_v9  ;;  %v1612_v23 = vunpack.i.h.bf16 %v1610_v8  ;;  %v1607_v31 = vunpack.i.h.bf16 %v1605_v9 }
 0x3b7   :  { %v728_v22 = vsel %vm321_vm11, %v726_v19, %v1611_v11  ;;  %v720_v32 = vsel %vm318_vm10, %v718_v29, %v1606_v12  ;;  %v729_v24 = vsel %vm321_vm11, %v727_v36, %v1612_v23  ;;  %v721_v26 = vsel %vm318_vm10, %v719_v14, %v1607_v31  ;;  %v1099_v31 = vld [vmem:[%s2368_s1 + $0x38] sm:$0xff] }
 0x3b8   :  { %v797_v25 = vpop.permute.xlu1 %796  ;;  %v1615_v27 = vpop.permute.xlu0 %1614  ;;  %909 = vmatprep.mubr.f32.mxu0 %v728_v22 }
 0x3b9   :  { %v1616_v30 = vunpack.i.l.bf16 %v1615_v27  ;;  %1521 = vmatprep.subr.mxu1 %v797_v25  ;;  %v1617_v34 = vunpack.i.h.bf16 %v1615_v27 }
 0x3ba   :  { %1522 = vmatpush3.msra.mxu1 %v797_v25  ;;  %v1100_v25 = vld [vmem:[%s2368_s1 + $0x48] sm:$0xff] }
 0x3bb   :  { %v722_v35 = vsel %vm321_vm11, %v720_v32, %v1616_v30  ;;  %v723_v39 = vsel %vm321_vm11, %v721_v26, %v1617_v34  ;;  %v1115_v30 = vld [vmem:[%s2368_s1 + $0x138] sm:$0xff]  ;;  %v1114_v32 = vld [vmem:[%s2368_s1 + $0x128] sm:$0xff] }
 0x3bc   :  { %v715_v37 = vpop.permute.xlu1 %714  ;;  %v795_v62 = vpop.permute.xlu0 %794  ;;  %910 = vmatmul.mubr.f32.vlgmr.msra.gmra.mxu0 %v722_v35 }
 0x3bd   :  { %914 = vmatprep.mubr.f32.mxu0 %v729_v24  ;;  %1523 = vmatprep.subr.mxu1 %v795_v62  ;;  %v1098_v24 = vld [vmem:[%s2368_s1 + $0x28] sm:$0xff] }
 0x3be   :  { %1525 = vmatprep.mubr.msk.f32.mxu1 %vm63_vm0, %v715_v37  ;;  %1524 = vmatpush3.msra.mxu1 %v795_v62 }
 0x3bf   :  { %1451 = vmatprep.subr.mxu1 %v1127_v16 }
 0x3c0   :  { %v717_v38 = vpop.permute.xlu0 %716  ;;  %915 = vmatmul.mubr.f32.gmra.mxu0 %v723_v39  ;;  %v839_v1 = vpop.permute.xlu1 %838 }
 0x3c1   :  { %1526 = vmatmul.mubr.msk.f32.vlgmr.msra.gmra.mxu1 %vm63_vm0, %v717_v38 }
 0x3c2   :  { %1452 = vmatpush3.msra.mxu1 %v1111_v61 }
 0x3c3   :  { %1453 = vmatprep.subr.mxu1 %v1126_v51  ;;  %v1129_v51 = vld [vmem:[%s2368_s1 + $0x218] sm:$0xff] }
 0x3c4   :  { %1454 = vmatpush3.msra.mxu1 %v1110_v45  ;;  %v1128_v45 = vld [vmem:[%s2368_s1 + $0x208] sm:$0xff] }
 0x3c5   :  { %1455 = vmatprep.subr.mxu1 %v1125_v54 }
 0x3c6   :  { %1456 = vmatpush3.msra.mxu1 %v1109_v21 }
 0x3c7   :  { %1457 = vmatprep.subr.mxu1 %v1124_v53 }
 0x3c8   :  { %1458 = vmatpush3.msra.mxu1 %v1108_v55 }
 0x3c9   :  { %1459 = vmatprep.subr.mxu1 %v1123_v57 }
 0x3ca   :  { %1460 = vmatpush3.msra.mxu1 %v1107_v52 }
 0x3cb   :  { %1461 = vmatprep.subr.mxu1 %v1122_v58 }
 0x3cc   :  { %1462 = vmatpush3.msra.mxu1 %v1106_v59 }
 0x3cd   :  { %1463 = vmatprep.subr.mxu1 %v1121_v63 }
 0x3ce   :  { %1464 = vmatpush3.msra.mxu1 %v1105_v60 }
 0x3cf   :  { %1465 = vmatprep.subr.mxu1 %v1120_v46 }
 0x3d0   :  { %1466 = vmatpush3.msra.mxu1 %v1104_v47 }
 0x3d1   :  { %1467 = vmatprep.subr.mxu1 %v1119_v18 }
 0x3d2   :  { %1468 = vmatpush3.msra.mxu1 %v1103_v6 }
 0x3d3   :  { %1469 = vmatprep.subr.mxu1 %v1118_v7 }
 0x3d4   :  { %1470 = vmatpush3.msra.mxu1 %v1102_v10 }
 0x3d5   :  { %1471 = vmatprep.subr.mxu1 %v1117_v13 }
 0x3d6   :  { %1472 = vmatpush3.msra.mxu1 %v1101_v15 }
 0x3d7   :  { %1473 = vmatprep.subr.mxu1 %v1116_v17 }
 0x3d8   :  { %1474 = vmatpush3.msra.mxu1 %v1100_v25 }
 0x3d9   :  { %1475 = vmatprep.subr.mxu1 %v1115_v30 }
 0x3da   :  { %1476 = vmatpush3.msra.mxu1 %v1099_v31 }
 0x3db   :  { %1477 = vmatprep.subr.mxu1 %v1114_v32 }
 0x3dc   :  { %1478 = vmatpush3.msra.mxu1 %v1098_v24 }
 0x47c   :  { %v1439_v41 = vpop.f32.mrf.mxu0 }
 0x47e   :  { %v1440_v0 = vpop.f32.mrf.mxu0 }
 0x47f   :  { %v1441_v2 = vadd.f32 %v1440_v0, %v1439_v41  ;;  %v1113_v41 = vld [vmem:[%s2368_s1 + $0x118] sm:$0xff] }
 0x480   :  { %v1442_v3 = vpop.f32.mrf.mxu0  ;;  %1479 = vmatprep.subr.mxu1 %v1113_v41 }
 0x481   :  { %v912_v56 = vadd.f32 %v1441_v2, %v839_v1  ;;  %v1527_v42 = vpop.f32.mrf.mxu1  ;;  %v1112_v2 = vld [vmem:[%s2368_s1 + $0x108] sm:$0xff] }
 0x482   :  { %v1443_v43 = vpop.f32.mrf.mxu0 }
 0x483   :  { %v1444_v40 = vadd.f32 %v1443_v43, %v1442_v3  ;;  %v986_v44 = vpop.f32.mrf.mxu1  ;;  %v1096_v43 = vld [vmem:[%s2368_s1 + $0x8] sm:$0xff] }
 0x484   :  { %v2192_v48 = vadd.f32 %v986_v44, %v912_v56 }
 0x485   :  { %v917_v49 = vadd.f32 %v1444_v40, %v839_v1  ;;  %v1097_v1 = vld [vmem:[%s2368_s1 + $0x18] sm:$0xff] }
 0x486   :  { %v995_v4 = vmax.f32 %v2192_v48, 0.0  ;;  %1480 = vmatpush3.msra.mxu1 %v1097_v1  ;;  %v1131_v40 = vld [vmem:[%s2368_s1 + $0x238] sm:$0xff] }
 0x487   :  { %v2195_v50 = vadd.f32 %v1527_v42, %v917_v49  ;;  %1481 = vmatprep.subr.mxu1 %v1112_v2  ;;  %1528 = vmatprep.subr.mxu0 %v1131_v40 }
 0x488   :  { %999 = vrot.lane.b32.xlu0 %v995_v4, %s1644_s19  ;;  %1482 = vmatpush3.msra.mxu1 %v1096_v43 }
 0x489   :  { %v996_v5 = vmax.f32 %v2195_v50, 0.0  ;;  %1529 = vmatpush3.msra.mxu0 %v1131_v40 }
 0x48b   :  { %1001 = vrot.lane.b32.xlu1 %v996_v5, %s1644_s19  ;;  %v1130_v5 = vld [vmem:[%s2368_s1 + $0x228] sm:$0xff] }
 0x48c   :  { %1530 = vmatprep.subr.mxu0 %v1130_v5 }
 0x48d   :  { %1531 = vmatpush3.msra.mxu0 %v1130_v5 }
 0x48e   :  { %1532 = vmatprep.subr.mxu0 %v1129_v51 }
 0x48f   :  { %1533 = vmatpush3.msra.mxu0 %v1129_v51 }
 0x490   :  { %1534 = vmatprep.subr.mxu0 %v1128_v45 }
 0x491   :  { %1535 = vmatpush3.msra.mxu0 %v1128_v45 }
 0x4fa   :  { %v1000_v8 = vpop.permute.xlu0 %999 }
 0x4fb   :  { %v1005_v9 = vsel %vm228_vm1, 0.0, %v1000_v8 }
 0x4fc   :  { %v1007_v11 = vsel %vm231_vm2, %v1005_v9, 0.0 }
 0x4fd   :  { %v1010_v12 = vrot.slane %v1007_v11, 7  ;;  %v1002_v19 = vpop.permute.xlu1 %1001 }
 0x4fe   :  { %v1006_v20 = vsel %vm228_vm1, 0.0, %v1002_v19 }
 0x4ff   :  { %v1016_v22 = vsel %vm240_vm3, %v1010_v12, 0.0  ;;  %v1008_v23 = vsel %vm231_vm2, %v1006_v20, 0.0  ;;  %v2278_v27 = vsel %vm240_vm3, 0.0, %v1010_v12 }
 0x500   :  { %v1017_v28 = vsel %vm243_vm4, %v1016_v22, 0.0  ;;  %v1013_v29 = vrot.slane %v1008_v23, 5  ;;  %v1027_v35 = vrot.slane %v2278_v27, 1  ;;  %v1033_v3 = vrot.slane %v2278_v27, 2 }
 0x502   :  { %v1018_v33 = vsel %vm245_vm5, %v1017_v28, %v1013_v29  ;;  %v1019_v34 = vsel %vm245_vm5, %v1013_v29, 0.0 }
 0x503   :  { %v1022_v36 = vrot.slane %v1018_v33, 2  ;;  %v1028_v37 = vrot.slane %v1018_v33, 1  ;;  %v1030_v62 = vrot.slane %v1018_v33, 3  ;;  %v1023_v14 = vrot.slane %v1019_v34, 2 }
 0x504   :  { %v1031_v26 = vrot.slane %v1019_v34, 3  ;;  %v1035_v39 = vrot.slane %v1018_v33, 4  ;;  %v1036_v38 = vrot.slane %v1019_v34, 4  ;;  %v1316_v34 = vld [vmem:[%s2370_s2 + $0x1] ss:$0 sm:$0xff] }
 0x505   :  { %v1029_v0 = vsel %vm256_vm6, %v1027_v35, %v1028_v37  ;;  %v1034_v44 = vsel %vm250_vm8, %v1033_v3, %v1022_v36  ;;  %v1024_v4 = vsel %vm250_vm8, %v1022_v36, %v1023_v14 }
 0x506   :  { %v1032_v56 = vsel %vm260_vm7, %v1030_v62, %v1031_v26  ;;  %v1037_v49 = vsel %vm266_vm9, %v1035_v39, %v1036_v38  ;;  %v1628_v61 = vpack.i.bf16 %v1024_v4, %v2278_v27 }
 0x507   :  { %v1623_v42 = vpack.i.bf16 %v1032_v56, %v1029_v0  ;;  %v1633_v16 = vpack.i.bf16 %v1037_v49, %v1034_v44 }
 0x509   :  { %1624 = vrot.lane.b32.xlu1 %v1623_v42, %s1645_s21  ;;  %1619 = vrot.lane.b32.xlu0 %v1623_v42, %s1646_s22 }
 0x50d   :  { %1634 = vrot.lane.b32.xlu1 %v1633_v16, %s1647_s23  ;;  %1629 = vrot.lane.b32.xlu0 %v1628_v61, %s1648_s24 }
 0x511   :  { %1074 = vrot.lane.b32.xlu1 %v1034_v44, %s1650_s26  ;;  %1639 = vrot.lane.b32.xlu0 %v1628_v61, %s1649_s25 }
 0x515   :  { %1076 = vrot.lane.b32.xlu1 %v1037_v49, %s1650_s26  ;;  %1050 = vrot.lane.b32.xlu0 %v1029_v0, %s1643_s20 }
 0x519   :  { %1080 = vrot.lane.b32.xlu1 %v1034_v44, %s1651_s27  ;;  %1052 = vrot.lane.b32.xlu0 %v1032_v56, %s1643_s20 }
 0x51d   :  { %1295 = vrot.lane.b32.xlu1 %v2192_v48, %s1643_s20  ;;  %1082 = vrot.lane.b32.xlu0 %v1037_v49, %s1651_s27 }
 0x521   :  { %1297 = vrot.lane.b32.xlu0 %v2195_v50, %s1643_s20 }
 0x57b   :  { %v1625_v54 = vpop.permute.xlu1 %1624  ;;  %v1620_v21 = vpop.permute.xlu0 %1619 }
 0x57c   :  { %v1626_v53 = vunpack.i.l.bf16 %v1625_v54  ;;  %v1621_v55 = vunpack.i.l.bf16 %v1620_v21  ;;  %v1627_v60 = vunpack.i.h.bf16 %v1625_v54  ;;  %v1622_v46 = vunpack.i.h.bf16 %v1620_v21 }
 0x57e   :  { %v1090_v63 = vsel %vm63_vm0, %v1621_v55, %v1626_v53  ;;  %v1091_v11 = vsel %vm63_vm0, %v1622_v46, %v1627_v60 }
 0x57f   :  { %v1635_v57 = vpop.permute.xlu1 %1634  ;;  %v1630_v52 = vpop.permute.xlu0 %1629 }
 0x580   :  { %v1636_v58 = vunpack.i.l.bf16 %v1635_v57  ;;  %v1631_v59 = vunpack.i.l.bf16 %v1630_v52  ;;  %v1637_v48 = vunpack.i.h.bf16 %v1635_v57  ;;  %v1632_v9 = vunpack.i.h.bf16 %v1630_v52 }
 0x582   :  { %v1092_v47 = vsel %vm318_vm10, %v1090_v63, %v1636_v58  ;;  %v1084_v8 = vsel %vm63_vm0, %v2278_v27, %v1631_v59  ;;  %v1093_v12 = vsel %vm318_vm10, %v1091_v11, %v1637_v48  ;;  %v1085_v22 = vsel %vm63_vm0, %v1024_v4, %v1632_v9 }
 0x583   :  { %v1075_v18 = vpop.permute.xlu1 %1074  ;;  %v1640_v6 = vpop.permute.xlu0 %1639 }
 0x584   :  { %v1641_v7 = vunpack.i.l.bf16 %v1640_v6  ;;  %v1094_v50 = vsel %vm321_vm11, %v1092_v47, %v1075_v18  ;;  %v1642_v13 = vunpack.i.h.bf16 %v1640_v6 }
 0x585   :  { %1207 = vmatprep.mubr.f32.mxu1 %v1094_v50 }
 0x586   :  { %v1086_v10 = vsel %vm318_vm10, %v1084_v8, %v1641_v7  ;;  %v1087_v27 = vsel %vm318_vm10, %v1085_v22, %v1642_v13 }
 0x587   :  { %v1077_v15 = vpop.permute.xlu1 %1076  ;;  %v1051_v17 = vpop.permute.xlu0 %1050 }
 0x588   :  { %v1088_v19 = vsel %vm321_vm11, %v1086_v10, %v1051_v17  ;;  %v1095_v20 = vsel %vm321_vm11, %v1093_v12, %v1077_v15 }
 0x589   :  { %1208 = vmatmul.mubr.f32.vlgmr.msra.gmra.mxu1 %v1088_v19 }
 0x58a   :  { %1212 = vmatprep.mubr.f32.mxu1 %v1095_v20 }
 0x58b   :  { %v1081_v23 = vpop.permute.xlu1 %1080  ;;  %v1053_v25 = vpop.permute.xlu0 %1052 }
 0x58c   :  { %1536 = vmatprep.mubr.msk.f32.mxu0 %vm63_vm0, %v1081_v23  ;;  %v1089_v28 = vsel %vm321_vm11, %v1087_v27, %v1053_v25 }
 0x58d   :  { %1213 = vmatmul.mubr.f32.gmra.mxu1 %v1089_v28 }
 0x58f   :  { %v1083_v29 = vpop.permute.xlu0 %1082  ;;  %v1296_v39 = vpop.permute.xlu1 %1295 }
 0x590   :  { %1537 = vmatmul.mubr.msk.f32.vlgmr.msra.gmra.mxu0 %vm63_vm0, %v1083_v29 }
 0x593   :  { %v1298_v41 = vpop.permute.xlu0 %1297 }
 0x649   :  { %v1483_v30 = vpop.f32.mrf.mxu1 }
 0x64b   :  { %v1484_v31 = vpop.f32.mrf.mxu1 }
 0x64c   :  { %v1485_v32 = vadd.f32 %v1484_v31, %v1483_v30 }
 0x64d   :  { %v1486_v33 = vpop.f32.mrf.mxu1 }
 0x64e   :  { %v1210_v62 = vadd.f32 %v1485_v32, %v1316_v34 }
 0x64f   :  { %v1487_v35 = vpop.f32.mrf.mxu1 }
 0x650   :  { %v1488_v36 = vadd.f32 %v1487_v35, %v1486_v33  ;;  %v1538_v37 = vpop.f32.mrf.mxu0 }
 0x652   :  { %v1215_v24 = vadd.f32 %v1488_v36, %v1316_v34  ;;  %v1284_v14 = vpop.f32.mrf.mxu0 }
 0x653   :  { %v1285_v26 = vadd.f32 %v1284_v14, %v1210_v62 }
 0x654   :  { %v1290_v38 = vadd.f32 %v1538_v37, %v1215_v24 }
 0x655   :  { %v1301_v0 = vadd.f32 %v1296_v39, %v1285_v26 }
 0x656   :  { %v1302_v1 = vadd.f32 %v1298_v41, %v1290_v38 }
 0x657   :  { %1303 = vst.msk [vmem:[%s2371_s3] sm:$0xff] %vm63_vm0, %v1301_v0 }
 0x658   :  { %1304 = vst.msk [vmem:[%s2371_s3 + $0x8] sm:$0xff] %vm63_vm0, %v1302_v1 }

</bundles_post_ra>
